<compile_context>
chip_gen: v5e
topology: v5e:2x2
jax: 0.10.0
libtpu: 0.0.40
codegen_flags: <defaults>
</compile_context>

<pallas_src>
import functools

import jax
import jax.numpy as jnp
from jax.experimental import pallas as pl
from jax.experimental.pallas import tpu as pltpu


def _round_up(x, m):
    return (x + m - 1) // m * m


def _vmem_capacity_bytes():
    try:
        return int(pltpu.get_tpu_info().vmem_capacity_bytes)
    except Exception:
        return 64 * 1024 * 1024          # conservative: v7x per-core VMEM


_VMEM_CAP = _vmem_capacity_bytes()


def _pick_tc(T, Bb, Hp, x_bytes, w_bytes, vmem_cap):
    """Largest time-chunk whose working set fits a fraction of VMEM."""
    # Per-timestep VMEM: x chunk (double-buffered), out chunk (double-
    # buffered, f32), gi scratch (f32, single copy).
    per_t = Bb * (2 * Hp * x_bytes + 2 * Hp * 4 + 3 * Hp * 4)
    # Grid-invariant operands are still double-buffered by the pipeliner
    # (pipeline_mode=pl.Buffered(1) would free one copy; budget for 2 here).
    fixed = (2 * 2 * Hp * 3 * Hp * w_bytes      # W_ih^T, W_hh^T
             + 4 * 8 * 3 * Hp * 4               # biases (sublane-padded)
             + 3 * 2 * Bb * Hp * 4              # h0 / hn / hidden scratch
             + (2 << 20))                       # compiler-internal headroom
    budget = int(vmem_cap * 0.6)
    tc = (budget - fixed) // max(per_t, 1)
    return int(max(1, min(T, tc, 128)))


# -----------------------------------------------------------------------------
# Fused GRU-encoder kernel: chunk-level input GEMM + per-step recurrence.
# -----------------------------------------------------------------------------
def gru_encoder_kernel(maxlen_ref,                 # SMEM (1,)  scalar prefetch
                       len_ref, x_ref, h0_ref,     # VMEM inputs
                       wih_ref, bih_ref, whh_ref, bhh_ref,
                       out_ref, hn_ref,            # VMEM outputs
                       h_scratch, gi_scratch):     # VMEM scratch
    c = pl.program_id(1)
    n_chunks = pl.num_programs(1)
    Bb, Hp = h_scratch.shape
    Tc = out_ref.shape[0] // Bb
    t0 = c * Tc

    @pl.when(c == 0)
    def _init():
        h_scratch[...] = h0_ref[...]

    @pl.when(t0 < maxlen_ref[0])
    def _active_chunk():
        # Hoisted input projection for the whole chunk: one MXU-friendly GEMM
        # (Tc*Bb LHS rows) instead of Tc tiny per-step matmuls; the f32 result
        # lives only in VMEM scratch (no HBM round-trip).
        gi_scratch[...] = (
            jnp.dot(x_ref[...], wih_ref[...],
                    preferred_element_type=jnp.float32)
            + bih_ref[...])

        lens = len_ref[...]                                   # (Bb, 1) int32

        def step(i, carry):
            r0 = pl.multiple_of(i * Bb, 8)                    # sublane-aligned
            h = h_scratch[...]                                # (Bb, Hp) f32
            gi = gi_scratch[pl.ds(r0, Bb), :]                 # (Bb, 3Hp) f32
            gh = (jnp.dot(h.astype(whh_ref.dtype), whh_ref[...],
                          preferred_element_type=jnp.float32)
                  + bhh_ref[...])
            # PyTorch GRU gate order r, z, n; Hp % 128 == 0 keeps every slice
            # lane-aligned (no XLU relayouts, no masked stores).
            r = jax.nn.sigmoid(gi[:, 0:Hp] + gh[:, 0:Hp])
            z = jax.nn.sigmoid(gi[:, Hp:2 * Hp] + gh[:, Hp:2 * Hp])
            n = jnp.tanh(gi[:, 2 * Hp:3 * Hp] + r * gh[:, 2 * Hp:3 * Hp])
            h_new = (1.0 - z) * n + z * h
            # pack_padded_sequence semantics: emit/update only while t < len.
            mask = (t0 + i) < lens                            # (Bb, 1) bool
            out_ref[pl.ds(r0, Bb), :] = jnp.where(mask, h_new, 0.0)
            h_scratch[...] = jnp.where(mask, h_new, h)        # freeze past end
            return carry

        jax.lax.fori_loop(0, Tc, step, 0, unroll=min(Tc, 8))

    @pl.when(t0 >= maxlen_ref[0])
    def _dead_chunk():
        # Entire chunk lies past every sequence's end: skip all compute.
        out_ref[...] = jnp.zeros_like(out_ref)

    @pl.when(c == n_chunks - 1)
    def _finalize():
        hn_ref[...] = h_scratch[...]


# -----------------------------------------------------------------------------
# Wrapper: embedding gather, gate-blocked weight padding, single pallas_call.
# -----------------------------------------------------------------------------
@functools.partial(jax.jit, static_argnames=("mxu_dtype",))
def encoder_forward(tokens, lengths, hidden, params, mxu_dtype=jnp.bfloat16):
    emb = params["embedding"]       # (V, H)
    w_ih = params["w_ih"]           # (3H, H)  PyTorch weight_ih_l0 layout
    w_hh = params["w_hh"]           # (3H, H)  PyTorch weight_hh_l0 layout
    b_ih = params["b_ih"]           # (3H,)
    b_hh = params["b_hh"]           # (3H,)

    T, B = tokens.shape
    H = emb.shape[1]

    mxu = jnp.dtype(mxu_dtype)
    mxu_bytes = mxu.itemsize
    sub = 8 if mxu_bytes >= 4 else 16        # bf16 packs 2 rows per sublane
    Hp = _round_up(H, 128)                   # lane-dense hidden
    Bp = _round_up(B, sub)

    # Batch-block 'parallel' axis (v7x second TensorCore) only when each block
    # still keeps the per-step matmul MXU-efficient (>= 128 LHS rows).
    n_bblk = 2 if (Bp >= 256 and Bp % (2 * sub) == 0) else 1
    Bb = Bp // n_bblk

    Tc = _pick_tc(T, Bb, Hp, mxu_bytes, mxu_bytes, _VMEM_CAP)
    Tp = _round_up(T, Tc)
    n_chunks = Tp // Tc
    row_blk = Tc * Bb

    # Embedding lookup (gather) kept as XLA glue feeding the kernel.
    # TODO(synk): fuse the gather (scalar-prefetched token ids + row-indexed
    # DMA on the embedding table) to drop one HBM pass over the activations.
    x = jnp.take(emb, tokens, axis=0).astype(jnp.float32)        # (T, B, H)
    x = jnp.pad(x, ((0, Tp - T), (0, Bp - B), (0, Hp - H)))      # (Tp, Bp, Hp)
    # Row layout (n_bblk, Tp, Bb, Hp) so each (batch-block, chunk) is one
    # contiguous, lane-dense (Tc*Bb, Hp) slab -> no in-kernel reshapes.
    x = x.reshape(Tp, n_bblk, Bb, Hp).transpose(1, 0, 2, 3)
    x2d = x.reshape(n_bblk * Tp * Bb, Hp).astype(mxu)

    # Gate-blocked padding: gate g occupies columns [g*Hp, g*Hp + H); padded
    # rows/cols are zero so padded hidden/output columns stay exactly zero.
    def pad_gate_w(w):               # (3H, H) -> (Hp, 3Hp), transposed per gate
        w3 = w.reshape(3, H, H).transpose(0, 2, 1)               # (3, in, out)
        w3 = jnp.pad(w3, ((0, 0), (0, Hp - H), (0, Hp - H)))
        return jnp.concatenate([w3[0], w3[1], w3[2]], axis=1)

    def pad_gate_b(b):               # (3H,) -> (1, 3Hp) f32
        b3 = jnp.pad(b.reshape(3, H), ((0, 0), (0, Hp - H)))
        return b3.reshape(1, 3 * Hp).astype(jnp.float32)

    wih_t = pad_gate_w(w_ih).astype(mxu)
    whh_t = pad_gate_w(w_hh).astype(mxu)
    bih = pad_gate_b(b_ih)
    bhh = pad_gate_b(b_hh)

    h0 = jnp.pad(hidden[0].astype(jnp.float32), ((0, Bp - B), (0, Hp - H)))
    len2d = jnp.pad(lengths.astype(jnp.int32), (0, Bp - B)).reshape(Bp, 1)
    max_len = jnp.max(lengths).astype(jnp.int32).reshape(1)     # -> SMEM

    out2d, hn_pad = pl.pallas_call(
        gru_encoder_kernel,
        out_shape=(
            jax.ShapeDtypeStruct((n_bblk * Tp * Bb, Hp), jnp.float32),
            jax.ShapeDtypeStruct((Bp, Hp), jnp.float32),
        ),
        grid_spec=pltpu.PrefetchScalarGridSpec(
            num_scalar_prefetch=1,                       # max_len
            grid=(n_bblk, n_chunks),
            in_specs=[
                pl.BlockSpec((Bb, 1), lambda b, c, ml: (b, 0)),           # lengths
                pl.BlockSpec((row_blk, Hp),
                             lambda b, c, ml: (b * n_chunks + c, 0)),     # x chunk
                pl.BlockSpec((Bb, Hp), lambda b, c, ml: (b, 0)),          # h0
                pl.BlockSpec((Hp, 3 * Hp), lambda b, c, ml: (0, 0)),      # W_ih^T
                pl.BlockSpec((1, 3 * Hp), lambda b, c, ml: (0, 0)),       # b_ih
                pl.BlockSpec((Hp, 3 * Hp), lambda b, c, ml: (0, 0)),      # W_hh^T
                pl.BlockSpec((1, 3 * Hp), lambda b, c, ml: (0, 0)),       # b_hh
            ],
            out_specs=[
                pl.BlockSpec((row_blk, Hp),
                             lambda b, c, ml: (b * n_chunks + c, 0)),     # output
                pl.BlockSpec((Bb, Hp), lambda b, c, ml: (b, 0)),          # final h
            ],
            scratch_shapes=[
                pltpu.VMEM((Bb, Hp), jnp.float32),            # hidden carry
                pltpu.VMEM((row_blk, 3 * Hp), jnp.float32),   # chunk input proj
            ],
        ),
        compiler_params=pltpu.CompilerParams(
            dimension_semantics=("parallel", "arbitrary"),
            vmem_limit_bytes=int(_VMEM_CAP * 0.8)),
    )(max_len, len2d, x2d, h0, wih_t, bih, whh_t, bhh)

    out = (out2d.reshape(n_bblk, Tp, Bb, Hp)
                 .transpose(1, 0, 2, 3)
                 .reshape(Tp, Bp, Hp))[:T, :B, :H]
    h_n = hn_pad[:B, :H][None]
    return out, h_n


# -----------------------------------------------------------------------------
# Pure-JAX reference (correctness check only)
# -----------------------------------------------------------------------------
def encoder_forward_ref(tokens, lengths, hidden, params):
    emb = params["embedding"]
    w_ih, w_hh = params["w_ih"], params["w_hh"]
    b_ih, b_hh = params["b_ih"], params["b_hh"]
    T, B = tokens.shape
    H = emb.shape[1]
    x = jnp.take(emb, tokens, axis=0).astype(jnp.float32)

    def step(h, inp):
        xt, t = inp
        gi = xt @ w_ih.T + b_ih
        gh = h @ w_hh.T + b_hh
        r = jax.nn.sigmoid(gi[:, 0:H] + gh[:, 0:H])
        z = jax.nn.sigmoid(gi[:, H:2 * H] + gh[:, H:2 * H])
        n = jnp.tanh(gi[:, 2 * H:3 * H] + r * gh[:, 2 * H:3 * H])
        h_new = (1.0 - z) * n + z * h
        mask = (t < lengths)[:, None]
        return jnp.where(mask, h_new, h), jnp.where(mask, h_new, 0.0)

    h_n, outs = jax.lax.scan(step, hidden[0], (x, jnp.arange(T)))
    return outs, h_n[None]


if __name__ == "__main__":
    # Small shapes consistent with the module's forward:
    #   input: (T, B) int token ids, lengths: (B,) sorted descending (<= T),
    #   hidden: (1, B, H)
    V, H, T, B = 16, 32, 8, 4

    key = jax.random.PRNGKey(0)
    k_emb, k_wih, k_whh, k_bih, k_bhh, k_tok, k_h0 = jax.random.split(key, 7)

    bound = 1.0 / jnp.sqrt(H)
    params = {
        "embedding": jax.random.normal(k_emb, (V, H), jnp.float32),
        "w_ih": jax.random.uniform(k_wih, (3 * H, H), jnp.float32, -bound, bound),
        "w_hh": jax.random.uniform(k_whh, (3 * H, H), jnp.float32, -bound, bound),
        "b_ih": jax.random.uniform(k_bih, (3 * H,), jnp.float32, -bound, bound),
        "b_hh": jax.random.uniform(k_bhh, (3 * H,), jnp.float32, -bound, bound),
    }

    tokens = jax.random.randint(k_tok, (T, B), 0, V, jnp.int32)
    lengths = jnp.array([8, 6, 5, 3], dtype=jnp.int32)  # sorted desc, <= T
    hidden0 = jax.random.normal(k_h0, (1, B, H), jnp.float32)

    out_ref, h_ref = encoder_forward_ref(tokens, lengths, hidden0, params)

    # f32 MXU path: bit-tight check against the pure-JAX reference.
    out32, h32 = encoder_forward(tokens, lengths, hidden0, params,
                                 mxu_dtype=jnp.float32)
    out32 = jax.block_until_ready(out32)
    h32 = jax.block_until_ready(h32)
    assert jnp.allclose(out32, out_ref, atol=5e-5, rtol=5e-5), "f32 output mismatch"
    assert jnp.allclose(h32, h_ref, atol=5e-5, rtol=5e-5), "f32 hidden mismatch"

    # Default bf16 MXU fast path: same structure, looser tolerance.
    out16, h16 = encoder_forward(tokens, lengths, hidden0, params)
    out16 = jax.block_until_ready(out16)
    h16 = jax.block_until_ready(h16)
    assert jnp.allclose(out16, out_ref, atol=5e-2, rtol=5e-2), "bf16 output mismatch"
    assert jnp.allclose(h16, h_ref, atol=5e-2, rtol=5e-2), "bf16 hidden mismatch"

    # TODO(synk): the PackedSequence container itself has no Pallas/JAX
    # equivalent; the padded output (zeros past each length) + final hidden
    # reproduce its numerical content.
    print("KERNEL_OK")
</pallas_src>

<mosaic_0001>
module attributes {stable_mosaic.version = 11 : i64} {
  func.func @gru_encoder_kernel(%arg0: i32, %arg1: i32, %arg2: memref<1xi32, #tpu.memory_space<smem>>, %arg3: memref<8x1xi32, #tpu.memory_space<vmem>>, %arg4: memref<64x128xf32, #tpu.memory_space<vmem>>, %arg5: memref<8x128xf32, #tpu.memory_space<vmem>>, %arg6: memref<128x384xf32, #tpu.memory_space<vmem>>, %arg7: memref<1x384xf32, #tpu.memory_space<vmem>>, %arg8: memref<128x384xf32, #tpu.memory_space<vmem>>, %arg9: memref<1x384xf32, #tpu.memory_space<vmem>>, %arg10: memref<64x128xf32, #tpu.memory_space<vmem>>, %arg11: memref<8x128xf32, #tpu.memory_space<vmem>>, %arg12: memref<8x128xf32, #tpu.memory_space<vmem>>, %arg13: memref<64x384xf32, #tpu.memory_space<vmem>>) attributes {dimension_semantics = [#tpu.dimension_semantics<parallel>, #tpu.dimension_semantics<arbitrary>], iteration_bounds = array<i64: 1, 1>, scalar_prefetch = 1 : i64, scratch_operands = 2 : i64, tpu.core_type = #tpu.core_type<tc>, window_params = [{transform_indices = @transform_0, window_bounds = array<i64: 8, 1>}, {transform_indices = @transform_1, window_bounds = array<i64: 64, 128>}, {transform_indices = @transform_2, window_bounds = array<i64: 8, 128>}, {pipeline_mode = #tpu.pipeline_mode<synchronous>, transform_indices = @transform_3, window_bounds = array<i64: 128, 384>}, {pipeline_mode = #tpu.pipeline_mode<synchronous>, transform_indices = @transform_4, window_bounds = array<i64: 1, 384>}, {pipeline_mode = #tpu.pipeline_mode<synchronous>, transform_indices = @transform_5, window_bounds = array<i64: 128, 384>}, {pipeline_mode = #tpu.pipeline_mode<synchronous>, transform_indices = @transform_6, window_bounds = array<i64: 1, 384>}, {transform_indices = @transform_7, window_bounds = array<i64: 64, 128>}, {transform_indices = @transform_8, window_bounds = array<i64: 8, 128>}]} {
    %c8_i32 = arith.constant 8 : i32
    %0 = arith.muli %arg1, %c8_i32 : i32
    %c0_i32 = arith.constant 0 : i32
    %1 = arith.cmpi eq, %arg1, %c0_i32 : i32
    %2 = arith.extui %1 : i1 to i32
    %c0_i32_0 = arith.constant 0 : i32
    %3 = arith.cmpi ne, %2, %c0_i32_0 : i32
    scf.if %3 {
      %c0_6 = arith.constant 0 : index
      %c0_7 = arith.constant 0 : index
      %15 = vector.load %arg5[%c0_6, %c0_7] : memref<8x128xf32, #tpu.memory_space<vmem>>, vector<8x128xf32>
      %c0_8 = arith.constant 0 : index
      %c0_9 = arith.constant 0 : index
      %16 = vector.load %arg12[%c0_8, %c0_9] : memref<8x128xf32, #tpu.memory_space<vmem>>, vector<8x128xf32>
      tpu.vector_store %arg12[%c0_8, %c0_9], %15 {strides = array<i32>} : memref<8x128xf32, #tpu.memory_space<vmem>>, vector<8x128xf32>,
    } else {
    }
    %c0 = arith.constant 0 : index
    %4 = memref.load %arg2[%c0] : memref<1xi32, #tpu.memory_space<smem>>
    %5 = arith.cmpi slt, %0, %4 : i32
    %6 = arith.extui %5 : i1 to i32
    %c0_i32_1 = arith.constant 0 : i32
    %7 = arith.cmpi ne, %6, %c0_i32_1 : i32
    scf.if %7 {
      %c0_6 = arith.constant 0 : index
      %c0_7 = arith.constant 0 : index
      %15 = vector.load %arg4[%c0_6, %c0_7] : memref<64x128xf32, #tpu.memory_space<vmem>>, vector<64x128xf32>
      %c0_8 = arith.constant 0 : index
      %c0_9 = arith.constant 0 : index
      %16 = vector.load %arg6[%c0_8, %c0_9] : memref<128x384xf32, #tpu.memory_space<vmem>>, vector<128x384xf32>
      %cst = arith.constant dense<0.000000e+00> : vector<64x384xf32>
      %17 = tpu.matmul %15, %16, %cst {dimension_numbers = #tpu.dot_dimension_numbers<[1], [0], [0], [1], [0, 0, 1, 1], [], []>} : vector<64x128xf32>, vector<128x384xf32>, vector<64x384xf32> -> vector<64x384xf32>
      %c0_10 = arith.constant 0 : index
      %c0_11 = arith.constant 0 : index
      %18 = vector.load %arg7[%c0_10, %c0_11] : memref<1x384xf32, #tpu.memory_space<vmem>>, vector<1x384xf32>
      %19 = vector.broadcast %18 : vector<1x384xf32> to vector<64x384xf32>
      %20 = arith.addf %17, %19 : vector<64x384xf32>
      %c0_12 = arith.constant 0 : index
      %c0_13 = arith.constant 0 : index
      %21 = vector.load %arg13[%c0_12, %c0_13] : memref<64x384xf32, #tpu.memory_space<vmem>>, vector<64x384xf32>
      tpu.vector_store %arg13[%c0_12, %c0_13], %20 {strides = array<i32>} : memref<64x384xf32, #tpu.memory_space<vmem>>, vector<64x384xf32>,
      %c0_14 = arith.constant 0 : index
      %c0_15 = arith.constant 0 : index
      %22 = vector.load %arg3[%c0_14, %c0_15] : memref<8x1xi32, #tpu.memory_space<vmem>>, vector<8x1xi32>
      %c0_i32_16 = arith.constant 0 : i32
      %c8_i32_17 = arith.constant 8 : i32
      %23 = arith.muli %c0_i32_16, %c8_i32_17 : i32
      %24 = tpu.assume_multiple %23, 8 : i32
      %c0_18 = arith.constant 0 : index
      %c0_19 = arith.constant 0 : index
      %25 = vector.load %arg12[%c0_18, %c0_19] : memref<8x128xf32, #tpu.memory_space<vmem>>, vector<8x128xf32>
      %26 = arith.index_cast %24 : i32 to index
      %c0_20 = arith.constant 0 : index
      %27 = vector.load %arg13[%26, %c0_20] : memref<64x384xf32, #tpu.memory_space<vmem>>, vector<8x384xf32>
      %c0_21 = arith.constant 0 : index
      %c0_22 = arith.constant 0 : index
      %28 = vector.load %arg8[%c0_21, %c0_22] : memref<128x384xf32, #tpu.memory_space<vmem>>, vector<128x384xf32>
      %cst_23 = arith.constant dense<0.000000e+00> : vector<8x384xf32>
      %29 = tpu.matmul %25, %28, %cst_23 {dimension_numbers = #tpu.dot_dimension_numbers<[1], [0], [0], [1], [0, 0, 1, 1], [], []>} : vector<8x128xf32>, vector<128x384xf32>, vector<8x384xf32> -> vector<8x384xf32>
      %c0_24 = arith.constant 0 : index
      %c0_25 = arith.constant 0 : index
      %30 = vector.load %arg9[%c0_24, %c0_25] : memref<1x384xf32, #tpu.memory_space<vmem>>, vector<1x384xf32>
      %31 = vector.broadcast %30 : vector<1x384xf32> to vector<8x384xf32>
      %32 = arith.addf %29, %31 : vector<8x384xf32>
      %33 = vector.extract_strided_slice %27 {offsets = [0, 0], sizes = [8, 128], strides = [1, 1]} : vector<8x384xf32> to vector<8x128xf32>
      %34 = vector.extract_strided_slice %32 {offsets = [0, 0], sizes = [8, 128], strides = [1, 1]} : vector<8x384xf32> to vector<8x128xf32>
      %35 = arith.addf %33, %34 : vector<8x128xf32>
      %36 = arith.negf %35 : vector<8x128xf32>
      %37 = math.exp %36 : vector<8x128xf32>
      %cst_26 = arith.constant 1.000000e+00 : f32
      %38 = vector.broadcast %cst_26 : f32 to vector<8x128xf32>
      %39 = arith.addf %38, %37 : vector<8x128xf32>
      %40 = arith.divf %38, %39 : vector<8x128xf32>
      %41 = vector.extract_strided_slice %27 {offsets = [0, 128], sizes = [8, 128], strides = [1, 1]} : vector<8x384xf32> to vector<8x128xf32>
      %42 = vector.extract_strided_slice %32 {offsets = [0, 128], sizes = [8, 128], strides = [1, 1]} : vector<8x384xf32> to vector<8x128xf32>
      %43 = arith.addf %41, %42 : vector<8x128xf32>
      %44 = arith.negf %43 : vector<8x128xf32>
      %45 = math.exp %44 : vector<8x128xf32>
      %cst_27 = arith.constant 1.000000e+00 : f32
      %46 = vector.broadcast %cst_27 : f32 to vector<8x128xf32>
      %47 = arith.addf %46, %45 : vector<8x128xf32>
      %48 = arith.divf %46, %47 : vector<8x128xf32>
      %49 = vector.extract_strided_slice %27 {offsets = [0, 256], sizes = [8, 128], strides = [1, 1]} : vector<8x384xf32> to vector<8x128xf32>
      %50 = vector.extract_strided_slice %32 {offsets = [0, 256], sizes = [8, 128], strides = [1, 1]} : vector<8x384xf32> to vector<8x128xf32>
      %51 = arith.mulf %40, %50 : vector<8x128xf32>
      %52 = arith.addf %49, %51 : vector<8x128xf32>
      %53 = math.tanh %52 : vector<8x128xf32>
      %cst_28 = arith.constant 1.000000e+00 : f32
      %54 = vector.broadcast %cst_28 : f32 to vector<8x128xf32>
      %55 = arith.subf %54, %48 : vector<8x128xf32>
      %56 = arith.mulf %55, %53 : vector<8x128xf32>
      %57 = arith.mulf %48, %25 : vector<8x128xf32>
      %58 = arith.addf %56, %57 : vector<8x128xf32>
      %59 = arith.addi %0, %c0_i32_16 : i32
      %60 = vector.broadcast %59 : i32 to vector<8x1xi32>
      %61 = arith.cmpi slt, %60, %22 : vector<8x1xi32>
      %cst_29 = arith.constant 0.000000e+00 : f32
      %62 = vector.shape_cast %61 : vector<8x1xi1> to vector<8x1xi1>
      %63 = vector.broadcast %62 : vector<8x1xi1> to vector<8x128xi1>
      %64 = vector.broadcast %cst_29 : f32 to vector<8x128xf32>
      %65 = arith.select %63, %58, %64 : vector<8x128xi1>, vector<8x128xf32>
      %66 = arith.index_cast %24 : i32 to index
      %c0_30 = arith.constant 0 : index
      %67 = vector.load %arg10[%66, %c0_30] : memref<64x128xf32, #tpu.memory_space<vmem>>, vector<8x128xf32>
      tpu.vector_store %arg10[%66, %c0_30], %65 {strides = array<i32>} : memref<64x128xf32, #tpu.memory_space<vmem>>, vector<8x128xf32>,
      %68 = vector.shape_cast %61 : vector<8x1xi1> to vector<8x1xi1>
      %69 = vector.broadcast %68 : vector<8x1xi1> to vector<8x128xi1>
      %70 = arith.select %69, %58, %25 : vector<8x128xi1>, vector<8x128xf32>
      %c0_31 = arith.constant 0 : index
      %c0_32 = arith.constant 0 : index
      %71 = vector.load %arg12[%c0_31, %c0_32] : memref<8x128xf32, #tpu.memory_space<vmem>>, vector<8x128xf32>
      tpu.vector_store %arg12[%c0_31, %c0_32], %70 {strides = array<i32>} : memref<8x128xf32, #tpu.memory_space<vmem>>, vector<8x128xf32>,
      %c1_i32 = arith.constant 1 : i32
      %c8_i32_33 = arith.constant 8 : i32
      %72 = arith.muli %c1_i32, %c8_i32_33 : i32
      %73 = tpu.assume_multiple %72, 8 : i32
      %c0_34 = arith.constant 0 : index
      %c0_35 = arith.constant 0 : index
      %74 = vector.load %arg12[%c0_34, %c0_35] : memref<8x128xf32, #tpu.memory_space<vmem>>, vector<8x128xf32>
      %75 = arith.index_cast %73 : i32 to index
      %c0_36 = arith.constant 0 : index
      %76 = vector.load %arg13[%75, %c0_36] : memref<64x384xf32, #tpu.memory_space<vmem>>, vector<8x384xf32>
      %c0_37 = arith.constant 0 : index
      %c0_38 = arith.constant 0 : index
      %77 = vector.load %arg8[%c0_37, %c0_38] : memref<128x384xf32, #tpu.memory_space<vmem>>, vector<128x384xf32>
      %cst_39 = arith.constant dense<0.000000e+00> : vector<8x384xf32>
      %78 = tpu.matmul %74, %77, %cst_39 {dimension_numbers = #tpu.dot_dimension_numbers<[1], [0], [0], [1], [0, 0, 1, 1], [], []>} : vector<8x128xf32>, vector<128x384xf32>, vector<8x384xf32> -> vector<8x384xf32>
      %c0_40 = arith.constant 0 : index
      %c0_41 = arith.constant 0 : index
      %79 = vector.load %arg9[%c0_40, %c0_41] : memref<1x384xf32, #tpu.memory_space<vmem>>, vector<1x384xf32>
      %80 = vector.broadcast %79 : vector<1x384xf32> to vector<8x384xf32>
      %81 = arith.addf %78, %80 : vector<8x384xf32>
      %82 = vector.extract_strided_slice %76 {offsets = [0, 0], sizes = [8, 128], strides = [1, 1]} : vector<8x384xf32> to vector<8x128xf32>
      %83 = vector.extract_strided_slice %81 {offsets = [0, 0], sizes = [8, 128], strides = [1, 1]} : vector<8x384xf32> to vector<8x128xf32>
      %84 = arith.addf %82, %83 : vector<8x128xf32>
      %85 = arith.negf %84 : vector<8x128xf32>
      %86 = math.exp %85 : vector<8x128xf32>
      %cst_42 = arith.constant 1.000000e+00 : f32
      %87 = vector.broadcast %cst_42 : f32 to vector<8x128xf32>
      %88 = arith.addf %87, %86 : vector<8x128xf32>
      %89 = arith.divf %87, %88 : vector<8x128xf32>
      %90 = vector.extract_strided_slice %76 {offsets = [0, 128], sizes = [8, 128], strides = [1, 1]} : vector<8x384xf32> to vector<8x128xf32>
      %91 = vector.extract_strided_slice %81 {offsets = [0, 128], sizes = [8, 128], strides = [1, 1]} : vector<8x384xf32> to vector<8x128xf32>
      %92 = arith.addf %90, %91 : vector<8x128xf32>
      %93 = arith.negf %92 : vector<8x128xf32>
      %94 = math.exp %93 : vector<8x128xf32>
      %cst_43 = arith.constant 1.000000e+00 : f32
      %95 = vector.broadcast %cst_43 : f32 to vector<8x128xf32>
      %96 = arith.addf %95, %94 : vector<8x128xf32>
      %97 = arith.divf %95, %96 : vector<8x128xf32>
      %98 = vector.extract_strided_slice %76 {offsets = [0, 256], sizes = [8, 128], strides = [1, 1]} : vector<8x384xf32> to vector<8x128xf32>
      %99 = vector.extract_strided_slice %81 {offsets = [0, 256], sizes = [8, 128], strides = [1, 1]} : vector<8x384xf32> to vector<8x128xf32>
      %100 = arith.mulf %89, %99 : vector<8x128xf32>
      %101 = arith.addf %98, %100 : vector<8x128xf32>
      %102 = math.tanh %101 : vector<8x128xf32>
      %cst_44 = arith.constant 1.000000e+00 : f32
      %103 = vector.broadcast %cst_44 : f32 to vector<8x128xf32>
      %104 = arith.subf %103, %97 : vector<8x128xf32>
      %105 = arith.mulf %104, %102 : vector<8x128xf32>
      %106 = arith.mulf %97, %74 : vector<8x128xf32>
      %107 = arith.addf %105, %106 : vector<8x128xf32>
      %108 = arith.addi %0, %c1_i32 : i32
      %109 = vector.broadcast %108 : i32 to vector<8x1xi32>
      %110 = arith.cmpi slt, %109, %22 : vector<8x1xi32>
      %cst_45 = arith.constant 0.000000e+00 : f32
      %111 = vector.shape_cast %110 : vector<8x1xi1> to vector<8x1xi1>
      %112 = vector.broadcast %111 : vector<8x1xi1> to vector<8x128xi1>
      %113 = vector.broadcast %cst_45 : f32 to vector<8x128xf32>
      %114 = arith.select %112, %107, %113 : vector<8x128xi1>, vector<8x128xf32>
      %115 = arith.index_cast %73 : i32 to index
      %c0_46 = arith.constant 0 : index
      %116 = vector.load %arg10[%115, %c0_46] : memref<64x128xf32, #tpu.memory_space<vmem>>, vector<8x128xf32>
      tpu.vector_store %arg10[%115, %c0_46], %114 {strides = array<i32>} : memref<64x128xf32, #tpu.memory_space<vmem>>, vector<8x128xf32>,
      %117 = vector.shape_cast %110 : vector<8x1xi1> to vector<8x1xi1>
      %118 = vector.broadcast %117 : vector<8x1xi1> to vector<8x128xi1>
      %119 = arith.select %118, %107, %74 : vector<8x128xi1>, vector<8x128xf32>
      %c0_47 = arith.constant 0 : index
      %c0_48 = arith.constant 0 : index
      %120 = vector.load %arg12[%c0_47, %c0_48] : memref<8x128xf32, #tpu.memory_space<vmem>>, vector<8x128xf32>
      tpu.vector_store %arg12[%c0_47, %c0_48], %119 {strides = array<i32>} : memref<8x128xf32, #tpu.memory_space<vmem>>, vector<8x128xf32>,
      %c2_i32 = arith.constant 2 : i32
      %c8_i32_49 = arith.constant 8 : i32
      %121 = arith.muli %c2_i32, %c8_i32_49 : i32
      %122 = tpu.assume_multiple %121, 8 : i32
      %c0_50 = arith.constant 0 : index
      %c0_51 = arith.constant 0 : index
      %123 = vector.load %arg12[%c0_50, %c0_51] : memref<8x128xf32, #tpu.memory_space<vmem>>, vector<8x128xf32>
      %124 = arith.index_cast %122 : i32 to index
      %c0_52 = arith.constant 0 : index
      %125 = vector.load %arg13[%124, %c0_52] : memref<64x384xf32, #tpu.memory_space<vmem>>, vector<8x384xf32>
      %c0_53 = arith.constant 0 : index
      %c0_54 = arith.constant 0 : index
      %126 = vector.load %arg8[%c0_53, %c0_54] : memref<128x384xf32, #tpu.memory_space<vmem>>, vector<128x384xf32>
      %cst_55 = arith.constant dense<0.000000e+00> : vector<8x384xf32>
      %127 = tpu.matmul %123, %126, %cst_55 {dimension_numbers = #tpu.dot_dimension_numbers<[1], [0], [0], [1], [0, 0, 1, 1], [], []>} : vector<8x128xf32>, vector<128x384xf32>, vector<8x384xf32> -> vector<8x384xf32>
      %c0_56 = arith.constant 0 : index
      %c0_57 = arith.constant 0 : index
      %128 = vector.load %arg9[%c0_56, %c0_57] : memref<1x384xf32, #tpu.memory_space<vmem>>, vector<1x384xf32>
      %129 = vector.broadcast %128 : vector<1x384xf32> to vector<8x384xf32>
      %130 = arith.addf %127, %129 : vector<8x384xf32>
      %131 = vector.extract_strided_slice %125 {offsets = [0, 0], sizes = [8, 128], strides = [1, 1]} : vector<8x384xf32> to vector<8x128xf32>
      %132 = vector.extract_strided_slice %130 {offsets = [0, 0], sizes = [8, 128], strides = [1, 1]} : vector<8x384xf32> to vector<8x128xf32>
      %133 = arith.addf %131, %132 : vector<8x128xf32>
      %134 = arith.negf %133 : vector<8x128xf32>
      %135 = math.exp %134 : vector<8x128xf32>
      %cst_58 = arith.constant 1.000000e+00 : f32
      %136 = vector.broadcast %cst_58 : f32 to vector<8x128xf32>
      %137 = arith.addf %136, %135 : vector<8x128xf32>
      %138 = arith.divf %136, %137 : vector<8x128xf32>
      %139 = vector.extract_strided_slice %125 {offsets = [0, 128], sizes = [8, 128], strides = [1, 1]} : vector<8x384xf32> to vector<8x128xf32>
      %140 = vector.extract_strided_slice %130 {offsets = [0, 128], sizes = [8, 128], strides = [1, 1]} : vector<8x384xf32> to vector<8x128xf32>
      %141 = arith.addf %139, %140 : vector<8x128xf32>
      %142 = arith.negf %141 : vector<8x128xf32>
      %143 = math.exp %142 : vector<8x128xf32>
      %cst_59 = arith.constant 1.000000e+00 : f32
      %144 = vector.broadcast %cst_59 : f32 to vector<8x128xf32>
      %145 = arith.addf %144, %143 : vector<8x128xf32>
      %146 = arith.divf %144, %145 : vector<8x128xf32>
      %147 = vector.extract_strided_slice %125 {offsets = [0, 256], sizes = [8, 128], strides = [1, 1]} : vector<8x384xf32> to vector<8x128xf32>
      %148 = vector.extract_strided_slice %130 {offsets = [0, 256], sizes = [8, 128], strides = [1, 1]} : vector<8x384xf32> to vector<8x128xf32>
      %149 = arith.mulf %138, %148 : vector<8x128xf32>
      %150 = arith.addf %147, %149 : vector<8x128xf32>
      %151 = math.tanh %150 : vector<8x128xf32>
      %cst_60 = arith.constant 1.000000e+00 : f32
      %152 = vector.broadcast %cst_60 : f32 to vector<8x128xf32>
      %153 = arith.subf %152, %146 : vector<8x128xf32>
      %154 = arith.mulf %153, %151 : vector<8x128xf32>
      %155 = arith.mulf %146, %123 : vector<8x128xf32>
      %156 = arith.addf %154, %155 : vector<8x128xf32>
      %157 = arith.addi %0, %c2_i32 : i32
      %158 = vector.broadcast %157 : i32 to vector<8x1xi32>
      %159 = arith.cmpi slt, %158, %22 : vector<8x1xi32>
      %cst_61 = arith.constant 0.000000e+00 : f32
      %160 = vector.shape_cast %159 : vector<8x1xi1> to vector<8x1xi1>
      %161 = vector.broadcast %160 : vector<8x1xi1> to vector<8x128xi1>
      %162 = vector.broadcast %cst_61 : f32 to vector<8x128xf32>
      %163 = arith.select %161, %156, %162 : vector<8x128xi1>, vector<8x128xf32>
      %164 = arith.index_cast %122 : i32 to index
      %c0_62 = arith.constant 0 : index
      %165 = vector.load %arg10[%164, %c0_62] : memref<64x128xf32, #tpu.memory_space<vmem>>, vector<8x128xf32>
      tpu.vector_store %arg10[%164, %c0_62], %163 {strides = array<i32>} : memref<64x128xf32, #tpu.memory_space<vmem>>, vector<8x128xf32>,
      %166 = vector.shape_cast %159 : vector<8x1xi1> to vector<8x1xi1>
      %167 = vector.broadcast %166 : vector<8x1xi1> to vector<8x128xi1>
      %168 = arith.select %167, %156, %123 : vector<8x128xi1>, vector<8x128xf32>
      %c0_63 = arith.constant 0 : index
      %c0_64 = arith.constant 0 : index
      %169 = vector.load %arg12[%c0_63, %c0_64] : memref<8x128xf32, #tpu.memory_space<vmem>>, vector<8x128xf32>
      tpu.vector_store %arg12[%c0_63, %c0_64], %168 {strides = array<i32>} : memref<8x128xf32, #tpu.memory_space<vmem>>, vector<8x128xf32>,
      %c3_i32 = arith.constant 3 : i32
      %c8_i32_65 = arith.constant 8 : i32
      %170 = arith.muli %c3_i32, %c8_i32_65 : i32
      %171 = tpu.assume_multiple %170, 8 : i32
      %c0_66 = arith.constant 0 : index
      %c0_67 = arith.constant 0 : index
      %172 = vector.load %arg12[%c0_66, %c0_67] : memref<8x128xf32, #tpu.memory_space<vmem>>, vector<8x128xf32>
      %173 = arith.index_cast %171 : i32 to index
      %c0_68 = arith.constant 0 : index
      %174 = vector.load %arg13[%173, %c0_68] : memref<64x384xf32, #tpu.memory_space<vmem>>, vector<8x384xf32>
      %c0_69 = arith.constant 0 : index
      %c0_70 = arith.constant 0 : index
      %175 = vector.load %arg8[%c0_69, %c0_70] : memref<128x384xf32, #tpu.memory_space<vmem>>, vector<128x384xf32>
      %cst_71 = arith.constant dense<0.000000e+00> : vector<8x384xf32>
      %176 = tpu.matmul %172, %175, %cst_71 {dimension_numbers = #tpu.dot_dimension_numbers<[1], [0], [0], [1], [0, 0, 1, 1], [], []>} : vector<8x128xf32>, vector<128x384xf32>, vector<8x384xf32> -> vector<8x384xf32>
      %c0_72 = arith.constant 0 : index
      %c0_73 = arith.constant 0 : index
      %177 = vector.load %arg9[%c0_72, %c0_73] : memref<1x384xf32, #tpu.memory_space<vmem>>, vector<1x384xf32>
      %178 = vector.broadcast %177 : vector<1x384xf32> to vector<8x384xf32>
      %179 = arith.addf %176, %178 : vector<8x384xf32>
      %180 = vector.extract_strided_slice %174 {offsets = [0, 0], sizes = [8, 128], strides = [1, 1]} : vector<8x384xf32> to vector<8x128xf32>
      %181 = vector.extract_strided_slice %179 {offsets = [0, 0], sizes = [8, 128], strides = [1, 1]} : vector<8x384xf32> to vector<8x128xf32>
      %182 = arith.addf %180, %181 : vector<8x128xf32>
      %183 = arith.negf %182 : vector<8x128xf32>
      %184 = math.exp %183 : vector<8x128xf32>
      %cst_74 = arith.constant 1.000000e+00 : f32
      %185 = vector.broadcast %cst_74 : f32 to vector<8x128xf32>
      %186 = arith.addf %185, %184 : vector<8x128xf32>
      %187 = arith.divf %185, %186 : vector<8x128xf32>
      %188 = vector.extract_strided_slice %174 {offsets = [0, 128], sizes = [8, 128], strides = [1, 1]} : vector<8x384xf32> to vector<8x128xf32>
      %189 = vector.extract_strided_slice %179 {offsets = [0, 128], sizes = [8, 128], strides = [1, 1]} : vector<8x384xf32> to vector<8x128xf32>
      %190 = arith.addf %188, %189 : vector<8x128xf32>
      %191 = arith.negf %190 : vector<8x128xf32>
      %192 = math.exp %191 : vector<8x128xf32>
      %cst_75 = arith.constant 1.000000e+00 : f32
      %193 = vector.broadcast %cst_75 : f32 to vector<8x128xf32>
      %194 = arith.addf %193, %192 : vector<8x128xf32>
      %195 = arith.divf %193, %194 : vector<8x128xf32>
      %196 = vector.extract_strided_slice %174 {offsets = [0, 256], sizes = [8, 128], strides = [1, 1]} : vector<8x384xf32> to vector<8x128xf32>
      %197 = vector.extract_strided_slice %179 {offsets = [0, 256], sizes = [8, 128], strides = [1, 1]} : vector<8x384xf32> to vector<8x128xf32>
      %198 = arith.mulf %187, %197 : vector<8x128xf32>
      %199 = arith.addf %196, %198 : vector<8x128xf32>
      %200 = math.tanh %199 : vector<8x128xf32>
      %cst_76 = arith.constant 1.000000e+00 : f32
      %201 = vector.broadcast %cst_76 : f32 to vector<8x128xf32>
      %202 = arith.subf %201, %195 : vector<8x128xf32>
      %203 = arith.mulf %202, %200 : vector<8x128xf32>
      %204 = arith.mulf %195, %172 : vector<8x128xf32>
      %205 = arith.addf %203, %204 : vector<8x128xf32>
      %206 = arith.addi %0, %c3_i32 : i32
      %207 = vector.broadcast %206 : i32 to vector<8x1xi32>
      %208 = arith.cmpi slt, %207, %22 : vector<8x1xi32>
      %cst_77 = arith.constant 0.000000e+00 : f32
      %209 = vector.shape_cast %208 : vector<8x1xi1> to vector<8x1xi1>
      %210 = vector.broadcast %209 : vector<8x1xi1> to vector<8x128xi1>
      %211 = vector.broadcast %cst_77 : f32 to vector<8x128xf32>
      %212 = arith.select %210, %205, %211 : vector<8x128xi1>, vector<8x128xf32>
      %213 = arith.index_cast %171 : i32 to index
      %c0_78 = arith.constant 0 : index
      %214 = vector.load %arg10[%213, %c0_78] : memref<64x128xf32, #tpu.memory_space<vmem>>, vector<8x128xf32>
      tpu.vector_store %arg10[%213, %c0_78], %212 {strides = array<i32>} : memref<64x128xf32, #tpu.memory_space<vmem>>, vector<8x128xf32>,
      %215 = vector.shape_cast %208 : vector<8x1xi1> to vector<8x1xi1>
      %216 = vector.broadcast %215 : vector<8x1xi1> to vector<8x128xi1>
      %217 = arith.select %216, %205, %172 : vector<8x128xi1>, vector<8x128xf32>
      %c0_79 = arith.constant 0 : index
      %c0_80 = arith.constant 0 : index
      %218 = vector.load %arg12[%c0_79, %c0_80] : memref<8x128xf32, #tpu.memory_space<vmem>>, vector<8x128xf32>
      tpu.vector_store %arg12[%c0_79, %c0_80], %217 {strides = array<i32>} : memref<8x128xf32, #tpu.memory_space<vmem>>, vector<8x128xf32>,
      %c4_i32 = arith.constant 4 : i32
      %c8_i32_81 = arith.constant 8 : i32
      %219 = arith.muli %c4_i32, %c8_i32_81 : i32
      %220 = tpu.assume_multiple %219, 8 : i32
      %c0_82 = arith.constant 0 : index
      %c0_83 = arith.constant 0 : index
      %221 = vector.load %arg12[%c0_82, %c0_83] : memref<8x128xf32, #tpu.memory_space<vmem>>, vector<8x128xf32>
      %222 = arith.index_cast %220 : i32 to index
      %c0_84 = arith.constant 0 : index
      %223 = vector.load %arg13[%222, %c0_84] : memref<64x384xf32, #tpu.memory_space<vmem>>, vector<8x384xf32>
      %c0_85 = arith.constant 0 : index
      %c0_86 = arith.constant 0 : index
      %224 = vector.load %arg8[%c0_85, %c0_86] : memref<128x384xf32, #tpu.memory_space<vmem>>, vector<128x384xf32>
      %cst_87 = arith.constant dense<0.000000e+00> : vector<8x384xf32>
      %225 = tpu.matmul %221, %224, %cst_87 {dimension_numbers = #tpu.dot_dimension_numbers<[1], [0], [0], [1], [0, 0, 1, 1], [], []>} : vector<8x128xf32>, vector<128x384xf32>, vector<8x384xf32> -> vector<8x384xf32>
      %c0_88 = arith.constant 0 : index
      %c0_89 = arith.constant 0 : index
      %226 = vector.load %arg9[%c0_88, %c0_89] : memref<1x384xf32, #tpu.memory_space<vmem>>, vector<1x384xf32>
      %227 = vector.broadcast %226 : vector<1x384xf32> to vector<8x384xf32>
      %228 = arith.addf %225, %227 : vector<8x384xf32>
      %229 = vector.extract_strided_slice %223 {offsets = [0, 0], sizes = [8, 128], strides = [1, 1]} : vector<8x384xf32> to vector<8x128xf32>
      %230 = vector.extract_strided_slice %228 {offsets = [0, 0], sizes = [8, 128], strides = [1, 1]} : vector<8x384xf32> to vector<8x128xf32>
      %231 = arith.addf %229, %230 : vector<8x128xf32>
      %232 = arith.negf %231 : vector<8x128xf32>
      %233 = math.exp %232 : vector<8x128xf32>
      %cst_90 = arith.constant 1.000000e+00 : f32
      %234 = vector.broadcast %cst_90 : f32 to vector<8x128xf32>
      %235 = arith.addf %234, %233 : vector<8x128xf32>
      %236 = arith.divf %234, %235 : vector<8x128xf32>
      %237 = vector.extract_strided_slice %223 {offsets = [0, 128], sizes = [8, 128], strides = [1, 1]} : vector<8x384xf32> to vector<8x128xf32>
      %238 = vector.extract_strided_slice %228 {offsets = [0, 128], sizes = [8, 128], strides = [1, 1]} : vector<8x384xf32> to vector<8x128xf32>
      %239 = arith.addf %237, %238 : vector<8x128xf32>
      %240 = arith.negf %239 : vector<8x128xf32>
      %241 = math.exp %240 : vector<8x128xf32>
      %cst_91 = arith.constant 1.000000e+00 : f32
      %242 = vector.broadcast %cst_91 : f32 to vector<8x128xf32>
      %243 = arith.addf %242, %241 : vector<8x128xf32>
      %244 = arith.divf %242, %243 : vector<8x128xf32>
      %245 = vector.extract_strided_slice %223 {offsets = [0, 256], sizes = [8, 128], strides = [1, 1]} : vector<8x384xf32> to vector<8x128xf32>
      %246 = vector.extract_strided_slice %228 {offsets = [0, 256], sizes = [8, 128], strides = [1, 1]} : vector<8x384xf32> to vector<8x128xf32>
      %247 = arith.mulf %236, %246 : vector<8x128xf32>
      %248 = arith.addf %245, %247 : vector<8x128xf32>
      %249 = math.tanh %248 : vector<8x128xf32>
      %cst_92 = arith.constant 1.000000e+00 : f32
      %250 = vector.broadcast %cst_92 : f32 to vector<8x128xf32>
      %251 = arith.subf %250, %244 : vector<8x128xf32>
      %252 = arith.mulf %251, %249 : vector<8x128xf32>
      %253 = arith.mulf %244, %221 : vector<8x128xf32>
      %254 = arith.addf %252, %253 : vector<8x128xf32>
      %255 = arith.addi %0, %c4_i32 : i32
      %256 = vector.broadcast %255 : i32 to vector<8x1xi32>
      %257 = arith.cmpi slt, %256, %22 : vector<8x1xi32>
      %cst_93 = arith.constant 0.000000e+00 : f32
      %258 = vector.shape_cast %257 : vector<8x1xi1> to vector<8x1xi1>
      %259 = vector.broadcast %258 : vector<8x1xi1> to vector<8x128xi1>
      %260 = vector.broadcast %cst_93 : f32 to vector<8x128xf32>
      %261 = arith.select %259, %254, %260 : vector<8x128xi1>, vector<8x128xf32>
      %262 = arith.index_cast %220 : i32 to index
      %c0_94 = arith.constant 0 : index
      %263 = vector.load %arg10[%262, %c0_94] : memref<64x128xf32, #tpu.memory_space<vmem>>, vector<8x128xf32>
      tpu.vector_store %arg10[%262, %c0_94], %261 {strides = array<i32>} : memref<64x128xf32, #tpu.memory_space<vmem>>, vector<8x128xf32>,
      %264 = vector.shape_cast %257 : vector<8x1xi1> to vector<8x1xi1>
      %265 = vector.broadcast %264 : vector<8x1xi1> to vector<8x128xi1>
      %266 = arith.select %265, %254, %221 : vector<8x128xi1>, vector<8x128xf32>
      %c0_95 = arith.constant 0 : index
      %c0_96 = arith.constant 0 : index
      %267 = vector.load %arg12[%c0_95, %c0_96] : memref<8x128xf32, #tpu.memory_space<vmem>>, vector<8x128xf32>
      tpu.vector_store %arg12[%c0_95, %c0_96], %266 {strides = array<i32>} : memref<8x128xf32, #tpu.memory_space<vmem>>, vector<8x128xf32>,
      %c5_i32 = arith.constant 5 : i32
      %c8_i32_97 = arith.constant 8 : i32
      %268 = arith.muli %c5_i32, %c8_i32_97 : i32
      %269 = tpu.assume_multiple %268, 8 : i32
      %c0_98 = arith.constant 0 : index
      %c0_99 = arith.constant 0 : index
      %270 = vector.load %arg12[%c0_98, %c0_99] : memref<8x128xf32, #tpu.memory_space<vmem>>, vector<8x128xf32>
      %271 = arith.index_cast %269 : i32 to index
      %c0_100 = arith.constant 0 : index
      %272 = vector.load %arg13[%271, %c0_100] : memref<64x384xf32, #tpu.memory_space<vmem>>, vector<8x384xf32>
      %c0_101 = arith.constant 0 : index
      %c0_102 = arith.constant 0 : index
      %273 = vector.load %arg8[%c0_101, %c0_102] : memref<128x384xf32, #tpu.memory_space<vmem>>, vector<128x384xf32>
      %cst_103 = arith.constant dense<0.000000e+00> : vector<8x384xf32>
      %274 = tpu.matmul %270, %273, %cst_103 {dimension_numbers = #tpu.dot_dimension_numbers<[1], [0], [0], [1], [0, 0, 1, 1], [], []>} : vector<8x128xf32>, vector<128x384xf32>, vector<8x384xf32> -> vector<8x384xf32>
      %c0_104 = arith.constant 0 : index
      %c0_105 = arith.constant 0 : index
      %275 = vector.load %arg9[%c0_104, %c0_105] : memref<1x384xf32, #tpu.memory_space<vmem>>, vector<1x384xf32>
      %276 = vector.broadcast %275 : vector<1x384xf32> to vector<8x384xf32>
      %277 = arith.addf %274, %276 : vector<8x384xf32>
      %278 = vector.extract_strided_slice %272 {offsets = [0, 0], sizes = [8, 128], strides = [1, 1]} : vector<8x384xf32> to vector<8x128xf32>
      %279 = vector.extract_strided_slice %277 {offsets = [0, 0], sizes = [8, 128], strides = [1, 1]} : vector<8x384xf32> to vector<8x128xf32>
      %280 = arith.addf %278, %279 : vector<8x128xf32>
      %281 = arith.negf %280 : vector<8x128xf32>
      %282 = math.exp %281 : vector<8x128xf32>
      %cst_106 = arith.constant 1.000000e+00 : f32
      %283 = vector.broadcast %cst_106 : f32 to vector<8x128xf32>
      %284 = arith.addf %283, %282 : vector<8x128xf32>
      %285 = arith.divf %283, %284 : vector<8x128xf32>
      %286 = vector.extract_strided_slice %272 {offsets = [0, 128], sizes = [8, 128], strides = [1, 1]} : vector<8x384xf32> to vector<8x128xf32>
      %287 = vector.extract_strided_slice %277 {offsets = [0, 128], sizes = [8, 128], strides = [1, 1]} : vector<8x384xf32> to vector<8x128xf32>
      %288 = arith.addf %286, %287 : vector<8x128xf32>
      %289 = arith.negf %288 : vector<8x128xf32>
      %290 = math.exp %289 : vector<8x128xf32>
      %cst_107 = arith.constant 1.000000e+00 : f32
      %291 = vector.broadcast %cst_107 : f32 to vector<8x128xf32>
      %292 = arith.addf %291, %290 : vector<8x128xf32>
      %293 = arith.divf %291, %292 : vector<8x128xf32>
      %294 = vector.extract_strided_slice %272 {offsets = [0, 256], sizes = [8, 128], strides = [1, 1]} : vector<8x384xf32> to vector<8x128xf32>
      %295 = vector.extract_strided_slice %277 {offsets = [0, 256], sizes = [8, 128], strides = [1, 1]} : vector<8x384xf32> to vector<8x128xf32>
      %296 = arith.mulf %285, %295 : vector<8x128xf32>
      %297 = arith.addf %294, %296 : vector<8x128xf32>
      %298 = math.tanh %297 : vector<8x128xf32>
      %cst_108 = arith.constant 1.000000e+00 : f32
      %299 = vector.broadcast %cst_108 : f32 to vector<8x128xf32>
      %300 = arith.subf %299, %293 : vector<8x128xf32>
      %301 = arith.mulf %300, %298 : vector<8x128xf32>
      %302 = arith.mulf %293, %270 : vector<8x128xf32>
      %303 = arith.addf %301, %302 : vector<8x128xf32>
      %304 = arith.addi %0, %c5_i32 : i32
      %305 = vector.broadcast %304 : i32 to vector<8x1xi32>
      %306 = arith.cmpi slt, %305, %22 : vector<8x1xi32>
      %cst_109 = arith.constant 0.000000e+00 : f32
      %307 = vector.shape_cast %306 : vector<8x1xi1> to vector<8x1xi1>
      %308 = vector.broadcast %307 : vector<8x1xi1> to vector<8x128xi1>
      %309 = vector.broadcast %cst_109 : f32 to vector<8x128xf32>
      %310 = arith.select %308, %303, %309 : vector<8x128xi1>, vector<8x128xf32>
      %311 = arith.index_cast %269 : i32 to index
      %c0_110 = arith.constant 0 : index
      %312 = vector.load %arg10[%311, %c0_110] : memref<64x128xf32, #tpu.memory_space<vmem>>, vector<8x128xf32>
      tpu.vector_store %arg10[%311, %c0_110], %310 {strides = array<i32>} : memref<64x128xf32, #tpu.memory_space<vmem>>, vector<8x128xf32>,
      %313 = vector.shape_cast %306 : vector<8x1xi1> to vector<8x1xi1>
      %314 = vector.broadcast %313 : vector<8x1xi1> to vector<8x128xi1>
      %315 = arith.select %314, %303, %270 : vector<8x128xi1>, vector<8x128xf32>
      %c0_111 = arith.constant 0 : index
      %c0_112 = arith.constant 0 : index
      %316 = vector.load %arg12[%c0_111, %c0_112] : memref<8x128xf32, #tpu.memory_space<vmem>>, vector<8x128xf32>
      tpu.vector_store %arg12[%c0_111, %c0_112], %315 {strides = array<i32>} : memref<8x128xf32, #tpu.memory_space<vmem>>, vector<8x128xf32>,
      %c6_i32 = arith.constant 6 : i32
      %c8_i32_113 = arith.constant 8 : i32
      %317 = arith.muli %c6_i32, %c8_i32_113 : i32
      %318 = tpu.assume_multiple %317, 8 : i32
      %c0_114 = arith.constant 0 : index
      %c0_115 = arith.constant 0 : index
      %319 = vector.load %arg12[%c0_114, %c0_115] : memref<8x128xf32, #tpu.memory_space<vmem>>, vector<8x128xf32>
      %320 = arith.index_cast %318 : i32 to index
      %c0_116 = arith.constant 0 : index
      %321 = vector.load %arg13[%320, %c0_116] : memref<64x384xf32, #tpu.memory_space<vmem>>, vector<8x384xf32>
      %c0_117 = arith.constant 0 : index
      %c0_118 = arith.constant 0 : index
      %322 = vector.load %arg8[%c0_117, %c0_118] : memref<128x384xf32, #tpu.memory_space<vmem>>, vector<128x384xf32>
      %cst_119 = arith.constant dense<0.000000e+00> : vector<8x384xf32>
      %323 = tpu.matmul %319, %322, %cst_119 {dimension_numbers = #tpu.dot_dimension_numbers<[1], [0], [0], [1], [0, 0, 1, 1], [], []>} : vector<8x128xf32>, vector<128x384xf32>, vector<8x384xf32> -> vector<8x384xf32>
      %c0_120 = arith.constant 0 : index
      %c0_121 = arith.constant 0 : index
      %324 = vector.load %arg9[%c0_120, %c0_121] : memref<1x384xf32, #tpu.memory_space<vmem>>, vector<1x384xf32>
      %325 = vector.broadcast %324 : vector<1x384xf32> to vector<8x384xf32>
      %326 = arith.addf %323, %325 : vector<8x384xf32>
      %327 = vector.extract_strided_slice %321 {offsets = [0, 0], sizes = [8, 128], strides = [1, 1]} : vector<8x384xf32> to vector<8x128xf32>
      %328 = vector.extract_strided_slice %326 {offsets = [0, 0], sizes = [8, 128], strides = [1, 1]} : vector<8x384xf32> to vector<8x128xf32>
      %329 = arith.addf %327, %328 : vector<8x128xf32>
      %330 = arith.negf %329 : vector<8x128xf32>
      %331 = math.exp %330 : vector<8x128xf32>
      %cst_122 = arith.constant 1.000000e+00 : f32
      %332 = vector.broadcast %cst_122 : f32 to vector<8x128xf32>
      %333 = arith.addf %332, %331 : vector<8x128xf32>
      %334 = arith.divf %332, %333 : vector<8x128xf32>
      %335 = vector.extract_strided_slice %321 {offsets = [0, 128], sizes = [8, 128], strides = [1, 1]} : vector<8x384xf32> to vector<8x128xf32>
      %336 = vector.extract_strided_slice %326 {offsets = [0, 128], sizes = [8, 128], strides = [1, 1]} : vector<8x384xf32> to vector<8x128xf32>
      %337 = arith.addf %335, %336 : vector<8x128xf32>
      %338 = arith.negf %337 : vector<8x128xf32>
      %339 = math.exp %338 : vector<8x128xf32>
      %cst_123 = arith.constant 1.000000e+00 : f32
      %340 = vector.broadcast %cst_123 : f32 to vector<8x128xf32>
      %341 = arith.addf %340, %339 : vector<8x128xf32>
      %342 = arith.divf %340, %341 : vector<8x128xf32>
      %343 = vector.extract_strided_slice %321 {offsets = [0, 256], sizes = [8, 128], strides = [1, 1]} : vector<8x384xf32> to vector<8x128xf32>
      %344 = vector.extract_strided_slice %326 {offsets = [0, 256], sizes = [8, 128], strides = [1, 1]} : vector<8x384xf32> to vector<8x128xf32>
      %345 = arith.mulf %334, %344 : vector<8x128xf32>
      %346 = arith.addf %343, %345 : vector<8x128xf32>
      %347 = math.tanh %346 : vector<8x128xf32>
      %cst_124 = arith.constant 1.000000e+00 : f32
      %348 = vector.broadcast %cst_124 : f32 to vector<8x128xf32>
      %349 = arith.subf %348, %342 : vector<8x128xf32>
      %350 = arith.mulf %349, %347 : vector<8x128xf32>
      %351 = arith.mulf %342, %319 : vector<8x128xf32>
      %352 = arith.addf %350, %351 : vector<8x128xf32>
      %353 = arith.addi %0, %c6_i32 : i32
      %354 = vector.broadcast %353 : i32 to vector<8x1xi32>
      %355 = arith.cmpi slt, %354, %22 : vector<8x1xi32>
      %cst_125 = arith.constant 0.000000e+00 : f32
      %356 = vector.shape_cast %355 : vector<8x1xi1> to vector<8x1xi1>
      %357 = vector.broadcast %356 : vector<8x1xi1> to vector<8x128xi1>
      %358 = vector.broadcast %cst_125 : f32 to vector<8x128xf32>
      %359 = arith.select %357, %352, %358 : vector<8x128xi1>, vector<8x128xf32>
      %360 = arith.index_cast %318 : i32 to index
      %c0_126 = arith.constant 0 : index
      %361 = vector.load %arg10[%360, %c0_126] : memref<64x128xf32, #tpu.memory_space<vmem>>, vector<8x128xf32>
      tpu.vector_store %arg10[%360, %c0_126], %359 {strides = array<i32>} : memref<64x128xf32, #tpu.memory_space<vmem>>, vector<8x128xf32>,
      %362 = vector.shape_cast %355 : vector<8x1xi1> to vector<8x1xi1>
      %363 = vector.broadcast %362 : vector<8x1xi1> to vector<8x128xi1>
      %364 = arith.select %363, %352, %319 : vector<8x128xi1>, vector<8x128xf32>
      %c0_127 = arith.constant 0 : index
      %c0_128 = arith.constant 0 : index
      %365 = vector.load %arg12[%c0_127, %c0_128] : memref<8x128xf32, #tpu.memory_space<vmem>>, vector<8x128xf32>
      tpu.vector_store %arg12[%c0_127, %c0_128], %364 {strides = array<i32>} : memref<8x128xf32, #tpu.memory_space<vmem>>, vector<8x128xf32>,
      %c7_i32 = arith.constant 7 : i32
      %c8_i32_129 = arith.constant 8 : i32
      %366 = arith.muli %c7_i32, %c8_i32_129 : i32
      %367 = tpu.assume_multiple %366, 8 : i32
      %c0_130 = arith.constant 0 : index
      %c0_131 = arith.constant 0 : index
      %368 = vector.load %arg12[%c0_130, %c0_131] : memref<8x128xf32, #tpu.memory_space<vmem>>, vector<8x128xf32>
      %369 = arith.index_cast %367 : i32 to index
      %c0_132 = arith.constant 0 : index
      %370 = vector.load %arg13[%369, %c0_132] : memref<64x384xf32, #tpu.memory_space<vmem>>, vector<8x384xf32>
      %c0_133 = arith.constant 0 : index
      %c0_134 = arith.constant 0 : index
      %371 = vector.load %arg8[%c0_133, %c0_134] : memref<128x384xf32, #tpu.memory_space<vmem>>, vector<128x384xf32>
      %cst_135 = arith.constant dense<0.000000e+00> : vector<8x384xf32>
      %372 = tpu.matmul %368, %371, %cst_135 {dimension_numbers = #tpu.dot_dimension_numbers<[1], [0], [0], [1], [0, 0, 1, 1], [], []>} : vector<8x128xf32>, vector<128x384xf32>, vector<8x384xf32> -> vector<8x384xf32>
      %c0_136 = arith.constant 0 : index
      %c0_137 = arith.constant 0 : index
      %373 = vector.load %arg9[%c0_136, %c0_137] : memref<1x384xf32, #tpu.memory_space<vmem>>, vector<1x384xf32>
      %374 = vector.broadcast %373 : vector<1x384xf32> to vector<8x384xf32>
      %375 = arith.addf %372, %374 : vector<8x384xf32>
      %376 = vector.extract_strided_slice %370 {offsets = [0, 0], sizes = [8, 128], strides = [1, 1]} : vector<8x384xf32> to vector<8x128xf32>
      %377 = vector.extract_strided_slice %375 {offsets = [0, 0], sizes = [8, 128], strides = [1, 1]} : vector<8x384xf32> to vector<8x128xf32>
      %378 = arith.addf %376, %377 : vector<8x128xf32>
      %379 = arith.negf %378 : vector<8x128xf32>
      %380 = math.exp %379 : vector<8x128xf32>
      %cst_138 = arith.constant 1.000000e+00 : f32
      %381 = vector.broadcast %cst_138 : f32 to vector<8x128xf32>
      %382 = arith.addf %381, %380 : vector<8x128xf32>
      %383 = arith.divf %381, %382 : vector<8x128xf32>
      %384 = vector.extract_strided_slice %370 {offsets = [0, 128], sizes = [8, 128], strides = [1, 1]} : vector<8x384xf32> to vector<8x128xf32>
      %385 = vector.extract_strided_slice %375 {offsets = [0, 128], sizes = [8, 128], strides = [1, 1]} : vector<8x384xf32> to vector<8x128xf32>
      %386 = arith.addf %384, %385 : vector<8x128xf32>
      %387 = arith.negf %386 : vector<8x128xf32>
      %388 = math.exp %387 : vector<8x128xf32>
      %cst_139 = arith.constant 1.000000e+00 : f32
      %389 = vector.broadcast %cst_139 : f32 to vector<8x128xf32>
      %390 = arith.addf %389, %388 : vector<8x128xf32>
      %391 = arith.divf %389, %390 : vector<8x128xf32>
      %392 = vector.extract_strided_slice %370 {offsets = [0, 256], sizes = [8, 128], strides = [1, 1]} : vector<8x384xf32> to vector<8x128xf32>
      %393 = vector.extract_strided_slice %375 {offsets = [0, 256], sizes = [8, 128], strides = [1, 1]} : vector<8x384xf32> to vector<8x128xf32>
      %394 = arith.mulf %383, %393 : vector<8x128xf32>
      %395 = arith.addf %392, %394 : vector<8x128xf32>
      %396 = math.tanh %395 : vector<8x128xf32>
      %cst_140 = arith.constant 1.000000e+00 : f32
      %397 = vector.broadcast %cst_140 : f32 to vector<8x128xf32>
      %398 = arith.subf %397, %391 : vector<8x128xf32>
      %399 = arith.mulf %398, %396 : vector<8x128xf32>
      %400 = arith.mulf %391, %368 : vector<8x128xf32>
      %401 = arith.addf %399, %400 : vector<8x128xf32>
      %402 = arith.addi %0, %c7_i32 : i32
      %403 = vector.broadcast %402 : i32 to vector<8x1xi32>
      %404 = arith.cmpi slt, %403, %22 : vector<8x1xi32>
      %cst_141 = arith.constant 0.000000e+00 : f32
      %405 = vector.shape_cast %404 : vector<8x1xi1> to vector<8x1xi1>
      %406 = vector.broadcast %405 : vector<8x1xi1> to vector<8x128xi1>
      %407 = vector.broadcast %cst_141 : f32 to vector<8x128xf32>
      %408 = arith.select %406, %401, %407 : vector<8x128xi1>, vector<8x128xf32>
      %409 = arith.index_cast %367 : i32 to index
      %c0_142 = arith.constant 0 : index
      %410 = vector.load %arg10[%409, %c0_142] : memref<64x128xf32, #tpu.memory_space<vmem>>, vector<8x128xf32>
      tpu.vector_store %arg10[%409, %c0_142], %408 {strides = array<i32>} : memref<64x128xf32, #tpu.memory_space<vmem>>, vector<8x128xf32>,
      %411 = vector.shape_cast %404 : vector<8x1xi1> to vector<8x1xi1>
      %412 = vector.broadcast %411 : vector<8x1xi1> to vector<8x128xi1>
      %413 = arith.select %412, %401, %368 : vector<8x128xi1>, vector<8x128xf32>
      %c0_143 = arith.constant 0 : index
      %c0_144 = arith.constant 0 : index
      %414 = vector.load %arg12[%c0_143, %c0_144] : memref<8x128xf32, #tpu.memory_space<vmem>>, vector<8x128xf32>
      tpu.vector_store %arg12[%c0_143, %c0_144], %413 {strides = array<i32>} : memref<8x128xf32, #tpu.memory_space<vmem>>, vector<8x128xf32>,
      %c8_i32_145 = arith.constant 8 : i32
    } else {
    }
    %c0_2 = arith.constant 0 : index
    %8 = memref.load %arg2[%c0_2] : memref<1xi32, #tpu.memory_space<smem>>
    %9 = arith.cmpi sge, %0, %8 : i32
    %10 = arith.extui %9 : i1 to i32
    %c0_i32_3 = arith.constant 0 : i32
    %11 = arith.cmpi ne, %10, %c0_i32_3 : i32
    scf.if %11 {
      %cst = arith.constant 0.000000e+00 : f32
      %15 = vector.broadcast %cst : f32 to vector<64x128xf32>
      %c0_6 = arith.constant 0 : index
      %c0_7 = arith.constant 0 : index
      %16 = vector.load %arg10[%c0_6, %c0_7] : memref<64x128xf32, #tpu.memory_space<vmem>>, vector<64x128xf32>
      tpu.vector_store %arg10[%c0_6, %c0_7], %15 {strides = array<i32>} : memref<64x128xf32, #tpu.memory_space<vmem>>, vector<64x128xf32>,
    } else {
    }
    %c0_i32_4 = arith.constant 0 : i32
    %12 = arith.cmpi eq, %arg1, %c0_i32_4 : i32
    %13 = arith.extui %12 : i1 to i32
    %c0_i32_5 = arith.constant 0 : i32
    %14 = arith.cmpi ne, %13, %c0_i32_5 : i32
    scf.if %14 {
      %c0_6 = arith.constant 0 : index
      %c0_7 = arith.constant 0 : index
      %15 = vector.load %arg12[%c0_6, %c0_7] : memref<8x128xf32, #tpu.memory_space<vmem>>, vector<8x128xf32>
      %c0_8 = arith.constant 0 : index
      %c0_9 = arith.constant 0 : index
      %16 = vector.load %arg11[%c0_8, %c0_9] : memref<8x128xf32, #tpu.memory_space<vmem>>, vector<8x128xf32>
      tpu.vector_store %arg11[%c0_8, %c0_9], %15 {strides = array<i32>} : memref<8x128xf32, #tpu.memory_space<vmem>>, vector<8x128xf32>,
    } else {
    }
    return
  }
  func.func @transform_0(%arg0: i32, %arg1: i32, %arg2: memref<1xi32, #tpu.memory_space<smem>>) -> (i32, i32) {
    %c0_i32 = arith.constant 0 : i32
    %c0_i32_0 = arith.constant 0 : i32
    return %arg0, %c0_i32 : i32, i32
  }
  func.func @transform_1(%arg0: i32, %arg1: i32, %arg2: memref<1xi32, #tpu.memory_space<smem>>) -> (i32, i32) {
    %c1_i32 = arith.constant 1 : i32
    %0 = arith.muli %arg0, %c1_i32 : i32
    %1 = arith.addi %0, %arg1 : i32
    %c0_i32 = arith.constant 0 : i32
    %c0_i32_0 = arith.constant 0 : i32
    return %1, %c0_i32 : i32, i32
  }
  func.func @transform_2(%arg0: i32, %arg1: i32, %arg2: memref<1xi32, #tpu.memory_space<smem>>) -> (i32, i32) {
    %c0_i32 = arith.constant 0 : i32
    %c0_i32_0 = arith.constant 0 : i32
    return %arg0, %c0_i32 : i32, i32
  }
  func.func @transform_3(%arg0: i32, %arg1: i32, %arg2: memref<1xi32, #tpu.memory_space<smem>>) -> (i32, i32) {
    %c0_i32 = arith.constant 0 : i32
    %c0_i32_0 = arith.constant 0 : i32
    %c0_i32_1 = arith.constant 0 : i32
    return %c0_i32, %c0_i32_0 : i32, i32
  }
  func.func @transform_4(%arg0: i32, %arg1: i32, %arg2: memref<1xi32, #tpu.memory_space<smem>>) -> (i32, i32) {
    %c0_i32 = arith.constant 0 : i32
    %c0_i32_0 = arith.constant 0 : i32
    %c0_i32_1 = arith.constant 0 : i32
    return %c0_i32, %c0_i32_0 : i32, i32
  }
  func.func @transform_5(%arg0: i32, %arg1: i32, %arg2: memref<1xi32, #tpu.memory_space<smem>>) -> (i32, i32) {
    %c0_i32 = arith.constant 0 : i32
    %c0_i32_0 = arith.constant 0 : i32
    %c0_i32_1 = arith.constant 0 : i32
    return %c0_i32, %c0_i32_0 : i32, i32
  }
  func.func @transform_6(%arg0: i32, %arg1: i32, %arg2: memref<1xi32, #tpu.memory_space<smem>>) -> (i32, i32) {
    %c0_i32 = arith.constant 0 : i32
    %c0_i32_0 = arith.constant 0 : i32
    %c0_i32_1 = arith.constant 0 : i32
    return %c0_i32, %c0_i32_0 : i32, i32
  }
  func.func @transform_7(%arg0: i32, %arg1: i32, %arg2: memref<1xi32, #tpu.memory_space<smem>>) -> (i32, i32) {
    %c1_i32 = arith.constant 1 : i32
    %0 = arith.muli %arg0, %c1_i32 : i32
    %1 = arith.addi %0, %arg1 : i32
    %c0_i32 = arith.constant 0 : i32
    %c0_i32_0 = arith.constant 0 : i32
    return %1, %c0_i32 : i32, i32
  }
  func.func @transform_8(%arg0: i32, %arg1: i32, %arg2: memref<1xi32, #tpu.memory_space<smem>>) -> (i32, i32) {
    %c0_i32 = arith.constant 0 : i32
    %c0_i32_0 = arith.constant 0 : i32
    return %arg0, %c0_i32 : i32, i32
  }
}

</mosaic_0001>

<bundles_post_ra>
// kernel: encoder_forward.1
= control target key start
LH: loop header
LB: loop body
LE: loop exit
PB: predicated region body
PF: predicated region fallthrough
CT: control target
= control target key end

     0   :  { %s3473_s0 = inlined_call_operand.<no memory space> [shape: s32[1], index: 0, kind: input, shape index: {}]   ;;  %s3474_s1 = inlined_call_operand.vmem [shape: s32[8,1], index: 1, kind: input, shape index: {}]   ;;  %s3475_s2 = inlined_call_operand.vmem [shape: f32[64,128], index: 2, kind: input, shape index: {}]   ;;  %s3476_s3 = inlined_call_operand.vmem [shape: f32[8,128], index: 3, kind: input, shape index: {}]   ;;  %s3477_s4 = inlined_call_operand.vmem [shape: f32[128,384], index: 4, kind: input, shape index: {}]   ;;  %s3478_s5 = inlined_call_operand.vmem [shape: f32[1,384], index: 5, kind: input, shape index: {}]   ;;  %s3479_s6 = inlined_call_operand.vmem [shape: f32[128,384], index: 6, kind: input, shape index: {}]   ;;  %s3480_s7 = inlined_call_operand.vmem [shape: f32[1,384], index: 7, kind: input, shape index: {}]   ;;  %s3481_s8 = inlined_call_operand.vmem [shape: f32[64,128], index: 8, kind: output, shape index: {0}]   ;;  %s3482_s9 = inlined_call_operand.vmem [shape: f32[8,128], index: 9, kind: output, shape index: {1}]  }
   0x1   :  { %15 = sst [smem:[#allocation5]] %s3473_s0  ;;  %v71_v0 = vld [vmem:[%s3476_s3] sm:$0xff]  ;;  %p1814_p0 = scmp.le.s32.totalorder %s3473_s0, 0 }
   0x2   :  { %72 = vst [vmem:[#allocation2] sm:$0xff] %v71_v0 }
   0x3   :  { %77 = sbr.rel (%p1814_p0) target bundleno = 1486 (0x5ce), region = 37 }
   0x8   :  { %v131_v1 = vld [vmem:[%s3477_s4 + $0x168] sm:$0xff]  ;;  %v128_v3 = vld [vmem:[%s3477_s4 + $0x150] sm:$0xff]  ;;  %v125_v5 = vld [vmem:[%s3477_s4 + $0x138] sm:$0xff] }
   0x9   :  { %v2001_v2 = vld [vmem:[%s3479_s6 + $0x168] sm:$0xff]  ;;  %142 = vmatpush.msra.mxu0 %v131_v1  ;;  %v2010_v4 = vld [vmem:[%s3479_s6 + $0x150] sm:$0xff]  ;;  %v2018_v6 = vld [vmem:[%s3479_s6 + $0x138] sm:$0xff] }
   0xa   :  { %353 = vmatpush.msra.mxu3 %v2001_v2  ;;  %v122_v7 = vld [vmem:[%s3477_s4 + $0x120] sm:$0xff]  ;;  %v119_v9 = vld [vmem:[%s3477_s4 + $0x108] sm:$0xff]  ;;  %v116_v11 = vld [vmem:[%s3477_s4 + $0xf0] sm:$0xff] }
   0xb   :  { %143 = vmatpush.msra.mxu0 %v128_v3  ;;  %v2027_v8 = vld [vmem:[%s3479_s6 + $0x120] sm:$0xff]  ;;  %v2036_v10 = vld [vmem:[%s3479_s6 + $0x108] sm:$0xff]  ;;  %v2045_v12 = vld [vmem:[%s3479_s6 + $0xf0] sm:$0xff] }
   0xc   :  { %354 = vmatpush.msra.mxu3 %v2010_v4  ;;  %v113_v13 = vld [vmem:[%s3477_s4 + $0xd8] sm:$0xff]  ;;  %v110_v15 = vld [vmem:[%s3477_s4 + $0xc0] sm:$0xff]  ;;  %v132_v17 = vld [vmem:[%s3477_s4 + $0x170] sm:$0xff] }
   0xd   :  { %144 = vmatpush.msra.mxu0 %v125_v5  ;;  %v2054_v14 = vld [vmem:[%s3479_s6 + $0xd8] sm:$0xff]  ;;  %v2063_v16 = vld [vmem:[%s3479_s6 + $0xc0] sm:$0xff]  ;;  %v107_v18 = vld [vmem:[%s3477_s4 + $0xa8] sm:$0xff]  ;;  %183 = vmatpush.msra.mxu1 %v132_v17 }
   0xe   :  { %355 = vmatpush.msra.mxu3 %v2018_v6  ;;  %v2075_v19 = vld [vmem:[%s3479_s6 + $0xa8] sm:$0xff]  ;;  %v129_v20 = vld [vmem:[%s3477_s4 + $0x158] sm:$0xff]  ;;  %v126_v21 = vld [vmem:[%s3477_s4 + $0x140] sm:$0xff] }
   0xf   :  { %145 = vmatpush.msra.mxu0 %v122_v7  ;;  %v104_v22 = vld [vmem:[%s3477_s4 + $0x90] sm:$0xff]  ;;  %184 = vmatpush.msra.mxu1 %v129_v20  ;;  %v123_v24 = vld [vmem:[%s3477_s4 + $0x128] sm:$0xff]  ;;  %v101_v25 = vld [vmem:[%s3477_s4 + $0x78] sm:$0xff] }
  0x10   :  { %356 = vmatpush.msra.mxu3 %v2027_v8  ;;  %v2090_v23 = vld [vmem:[%s3479_s6 + $0x90] sm:$0xff]  ;;  %v2102_v26 = vld [vmem:[%s3479_s6 + $0x78] sm:$0xff]  ;;  %v98_v28 = vld [vmem:[%s3477_s4 + $0x60] sm:$0xff] }
  0x11   :  { %146 = vmatpush.msra.mxu0 %v119_v9  ;;  %185 = vmatpush.msra.mxu1 %v126_v21  ;;  %v120_v27 = vld [vmem:[%s3477_s4 + $0x110] sm:$0xff]  ;;  %v2114_v29 = vld [vmem:[%s3479_s6 + $0x60] sm:$0xff]  ;;  %v117_v30 = vld [vmem:[%s3477_s4 + $0xf8] sm:$0xff] }
  0x12   :  { %357 = vmatpush.msra.mxu3 %v2036_v10  ;;  %v95_v31 = vld [vmem:[%s3477_s4 + $0x48] sm:$0xff]  ;;  %v114_v33 = vld [vmem:[%s3477_s4 + $0xe0] sm:$0xff]  ;;  %v92_v34 = vld [vmem:[%s3477_s4 + $0x30] sm:$0xff] }
  0x13   :  { %147 = vmatpush.msra.mxu0 %v116_v11  ;;  %186 = vmatpush.msra.mxu1 %v123_v24  ;;  %v2126_v32 = vld [vmem:[%s3479_s6 + $0x48] sm:$0xff]  ;;  %v2138_v35 = vld [vmem:[%s3479_s6 + $0x30] sm:$0xff]  ;;  %v89_v37 = vld [vmem:[%s3477_s4 + $0x18] sm:$0xff] }
  0x14   :  { %358 = vmatpush.msra.mxu3 %v2045_v12  ;;  %v111_v36 = vld [vmem:[%s3477_s4 + $0xc8] sm:$0xff]  ;;  %v2150_v38 = vld [vmem:[%s3479_s6 + $0x18] sm:$0xff]  ;;  %v108_v39 = vld [vmem:[%s3477_s4 + $0xb0] sm:$0xff] }
  0x15   :  { %148 = vmatpush.msra.mxu0 %v113_v13  ;;  %187 = vmatpush.msra.mxu1 %v120_v27  ;;  %v86_v40 = vld [vmem:[%s3477_s4] sm:$0xff]  ;;  %v133_v44 = vld [vmem:[%s3477_s4 + $0x178] sm:$0xff]  ;;  %v2178_v45 = vld [vmem:[%s3479_s6 + $0x170] sm:$0xff] }
  0x16   :  { %359 = vmatpush.msra.mxu3 %v2054_v14  ;;  %v2162_v41 = vld [vmem:[%s3479_s6] sm:$0xff]  ;;  %v2183_v46 = vld [vmem:[%s3479_s6 + $0x178] sm:$0xff]  ;;  %224 = vmatpush.msra.mxu2 %v133_v44  ;;  %v127_v52 = vld [vmem:[%s3477_s4 + $0x148] sm:$0xff] }
  0x17   :  { %149 = vmatpush.msra.mxu0 %v110_v15  ;;  %188 = vmatpush.msra.mxu1 %v117_v30  ;;  %v2168_v42 = vld [vmem:[%s3475_s2] sm:$0xff]  ;;  %v105_v47 = vld [vmem:[%s3477_s4 + $0x98] sm:$0xff]  ;;  %v2220_v54 = vld [vmem:[%s3479_s6 + $0x148] sm:$0xff] }
  0x18   :  { %360 = vmatpush.msra.mxu3 %v2063_v16  ;;  %v2170_v43 = vld [vmem:[#allocation2] sm:$0xff]  ;;  %v2197_v49 = vld [vmem:[%s3479_s6 + $0x158] sm:$0xff]  ;;  %v99_v55 = vld [vmem:[%s3477_s4 + $0x68] sm:$0xff] }
  0x19   :  { %150 = vmatpush.msra.mxu0 %v107_v18  ;;  %189 = vmatpush.msra.mxu1 %v114_v33  ;;  %v130_v48 = vld [vmem:[%s3477_s4 + $0x160] sm:$0xff]  ;;  %v124_v56 = vld [vmem:[%s3477_s4 + $0x130] sm:$0xff]  ;;  %v2233_v57 = vld [vmem:[%s3479_s6 + $0x128] sm:$0xff] }
  0x1a   :  { %361 = vmatpush.msra.mxu3 %v2075_v19  ;;  %v2202_v50 = vld [vmem:[%s3479_s6 + $0x160] sm:$0xff]  ;;  %225 = vmatpush.msra.mxu2 %v130_v48  ;;  %v2238_v58 = vld [vmem:[%s3479_s6 + $0x130] sm:$0xff]  ;;  %v2244_v59 = vld [vmem:[%s3475_s2 + $0x8] sm:$0xff] }
  0x1b   :  { %151 = vmatpush.msra.mxu0 %v104_v22  ;;  %190 = vmatpush.msra.mxu1 %v111_v36  ;;  %v102_v51 = vld [vmem:[%s3477_s4 + $0x80] sm:$0xff]  ;;  %v96_v60 = vld [vmem:[%s3477_s4 + $0x50] sm:$0xff]  ;;  %v2258_v62 = vld [vmem:[%s3479_s6 + $0x118] sm:$0xff] }
  0x1c   :  { %362 = vmatpush.msra.mxu3 %v2090_v23  ;;  %v2215_v53 = vld [vmem:[%s3479_s6 + $0x140] sm:$0xff]  ;;  %226 = vmatpush.msra.mxu2 %v127_v52  ;;  %v2253_v61 = vld [vmem:[%s3479_s6 + $0x110] sm:$0xff]  ;;  %v93_v63 = vld [vmem:[%s3477_s4 + $0x38] sm:$0xff] }
  0x1d   :  { %152 = vmatpush.msra.mxu0 %v101_v25  ;;  %191 = vmatpush.msra.mxu1 %v108_v39  ;;  %v121_v0 = vld [vmem:[%s3477_s4 + $0x118] sm:$0xff]  ;;  %v2277_v3 = vld [vmem:[%s3479_s6 + $0x100] sm:$0xff]  ;;  %v2295_v11 = vld [vmem:[%s3479_s6 + $0xe8] sm:$0xff] }
  0x1e   :  { %363 = vmatpush.msra.mxu3 %v2102_v26  ;;  %227 = vmatpush.msra.mxu2 %v124_v56  ;;  %v2272_v1 = vld [vmem:[%s3479_s6 + $0xf8] sm:$0xff]  ;;  %v90_v5 = vld [vmem:[%s3477_s4 + $0x20] sm:$0xff]  ;;  %v87_v13 = vld [vmem:[%s3477_s4 + $0x8] sm:$0xff] }
  0x1f   :  { %153 = vmatpush.msra.mxu0 %v98_v28  ;;  %192 = vmatpush.msra.mxu1 %v105_v47  ;;  %v118_v7 = vld [vmem:[%s3477_s4 + $0x100] sm:$0xff]  ;;  %v115_v15 = vld [vmem:[%s3477_s4 + $0xe8] sm:$0xff]  ;;  %v2313_v18 = vld [vmem:[%s3479_s6 + $0xd0] sm:$0xff] }
  0x20   :  { %364 = vmatpush.msra.mxu3 %v2114_v29  ;;  %v2290_v9 = vld [vmem:[%s3479_s6 + $0xe0] sm:$0xff]  ;;  %228 = vmatpush.msra.mxu2 %v121_v0  ;;  %v2308_v17 = vld [vmem:[%s3479_s6 + $0xc8] sm:$0xff]  ;;  %v2319_v20 = vld [vmem:[%s3475_s2 + $0x10] sm:$0xff] }
  0x21   :  { %154 = vmatpush.msra.mxu0 %v95_v31  ;;  %193 = vmatpush.msra.mxu1 %v102_v51  ;;  %v2325_v21 = vld [vmem:[%s3479_s6 + $0xb0] sm:$0xff]  ;;  %v2330_v22 = vld [vmem:[%s3479_s6 + $0xb8] sm:$0xff]  ;;  %v2346_v27 = vld [vmem:[%s3479_s6 + $0xa0] sm:$0xff] }
  0x22   :  { %365 = vmatpush.msra.mxu3 %v2126_v32  ;;  %229 = vmatpush.msra.mxu2 %v118_v7  ;;  %v112_v24 = vld [vmem:[%s3477_s4 + $0xd0] sm:$0xff]  ;;  %v2341_v25 = vld [vmem:[%s3479_s6 + $0x98] sm:$0xff]  ;;  %v2357_v30 = vld [vmem:[%s3479_s6 + $0x80] sm:$0xff] }
  0x23   :  { %155 = vmatpush.msra.mxu0 %v92_v34  ;;  %194 = vmatpush.msra.mxu1 %v99_v55  ;;  %v109_v28 = vld [vmem:[%s3477_s4 + $0xb8] sm:$0xff]  ;;  %v2362_v31 = vld [vmem:[%s3479_s6 + $0x88] sm:$0xff]  ;;  %v106_v33 = vld [vmem:[%s3477_s4 + $0xa0] sm:$0xff] }
  0x24   :  { %366 = vmatpush.msra.mxu3 %v2138_v35  ;;  %230 = vmatpush.msra.mxu2 %v115_v15  ;;  %v2373_v34 = vld [vmem:[%s3479_s6 + $0x68] sm:$0xff]  ;;  %v2378_v36 = vld [vmem:[%s3479_s6 + $0x70] sm:$0xff]  ;;  %v2399_v44 = vld [vmem:[%s3479_s6 + $0x58] sm:$0xff] }
  0x25   :  { %156 = vmatpush.msra.mxu0 %v89_v37  ;;  %195 = vmatpush.msra.mxu1 %v96_v60  ;;  %v2385_v37 = vld [vmem:[%s3475_s2 + $0x18] sm:$0xff]  ;;  %v103_v39 = vld [vmem:[%s3477_s4 + $0x88] sm:$0xff]  ;;  %v100_v47 = vld [vmem:[%s3477_s4 + $0x70] sm:$0xff] }
  0x26   :  { %367 = vmatpush.msra.mxu3 %v2150_v38  ;;  %231 = vmatpush.msra.mxu2 %v112_v24  ;;  %v2411_v48 = vld [vmem:[%s3479_s6 + $0x38] sm:$0xff]  ;;  %v2426_v52 = vld [vmem:[%s3479_s6 + $0x20] sm:$0xff]  ;;  %v2431_v55 = vld [vmem:[%s3479_s6 + $0x28] sm:$0xff] }
  0x27   :  { %157 = vmatpush.msra.mxu0 %v86_v40  ;;  %196 = vmatpush.msra.mxu1 %v93_v63  ;;  %v2394_v40 = vld [vmem:[%s3479_s6 + $0x50] sm:$0xff]  ;;  %v97_v51 = vld [vmem:[%s3477_s4 + $0x58] sm:$0xff]  ;;  %v94_v56 = vld [vmem:[%s3477_s4 + $0x40] sm:$0xff] }
  0x28   :  { %368 = vmatpush.msra.mxu3 %v2162_v41  ;;  %158 = vmatmul.f32.vlgmr.msra.gmra.mxu0 %v2168_v42  ;;  %v2442_v60 = vld [vmem:[%s3479_s6 + $0x8] sm:$0xff]  ;;  %v2447_v63 = vld [vmem:[%s3479_s6 + $0x10] sm:$0xff]  ;;  %v2454_v0 = vld [vmem:[%s3475_s2 + $0x20] sm:$0xff] }
  0x29   :  { %369 = vmatmul.f32.vlgmr.msra.gmra.mxu3 %v2170_v43  ;;  %393 = vmatpush.msrb.mxu0 %v2183_v46  ;;  %v2471_v7 = vld [vmem:[%s3474_s1] sm:$0xff]  ;;  %v2483_v15 = vld [vmem:[%s3475_s2 + $0x28] sm:$0xff] }
  0x2a   :  { %373 = vmatpush.msrb.mxu3 %v2178_v45  ;;  %197 = vmatpush.msra.mxu1 %v90_v5  ;;  %v91_v5 = vld [vmem:[%s3477_s4 + $0x28] sm:$0xff]  ;;  %vm1817_vm0 = vcmp.gt.s32.totalorder %v2471_v7, 0  ;;  %vm1820_vm1 = vcmp.gt.s32.totalorder %v2471_v7, 1  ;;  %vm1840_vm2 = vcmp.gt.s32.totalorder %v2471_v7, 6  ;;  %vm1824_vm12 = vcmp.gt.s32.totalorder %v2471_v7, 2 }
  0x2b   :  { %394 = vmatpush.msrb.mxu0 %v2202_v50  ;;  %232 = vmatpush.msra.mxu2 %v109_v28  ;;  %vm1828_vm13 = vcmp.gt.s32.totalorder %v2471_v7, 3 }
  0x2c   :  { %374 = vmatpush.msrb.mxu3 %v2197_v49  ;;  %198 = vmatpush.msra.mxu1 %v87_v13  ;;  %v3483_v13 = vmov 0  }
  0x2d   :  { %395 = vmatpush.msrb.mxu0 %v2220_v54  ;;  %199 = vmatmul.f32.vlgmr.msra.gmra.mxu1 %v2168_v42 }
  0x2e   :  { %375 = vmatpush.msrb.mxu3 %v2215_v53  ;;  %534 = vmatpush.msrb.mxu1 %v2001_v2 }
  0x2f   :  { %396 = vmatpush.msrb.mxu0 %v2238_v58  ;;  %233 = vmatpush.msra.mxu2 %v106_v33 }
  0x30   :  { %376 = vmatpush.msrb.mxu3 %v2233_v57  ;;  %161 = vmatmul.f32.gmra.mxu0 %v2244_v59 }
  0x31   :  { %397 = vmatpush.msrb.mxu0 %v2258_v62  ;;  %535 = vmatpush.msrb.mxu1 %v2010_v4 }
  0x32   :  { %377 = vmatpush.msrb.mxu3 %v2253_v61  ;;  %234 = vmatpush.msra.mxu2 %v103_v39 }
  0x33   :  { %398 = vmatpush.msrb.mxu0 %v2277_v3  ;;  %536 = vmatpush.msrb.mxu1 %v2018_v6  ;;  %v2416_v6 = vld [vmem:[%s3479_s6 + $0x40] sm:$0xff] }
  0x34   :  { %378 = vmatpush.msrb.mxu3 %v2272_v1  ;;  %235 = vmatpush.msra.mxu2 %v100_v47 }
  0x35   :  { %399 = vmatpush.msrb.mxu0 %v2295_v11  ;;  %202 = vmatmul.f32.gmra.mxu1 %v2244_v59 }
  0x36   :  { %379 = vmatpush.msrb.mxu3 %v2290_v9  ;;  %236 = vmatpush.msra.mxu2 %v97_v51 }
  0x37   :  { %400 = vmatpush.msrb.mxu0 %v2313_v18  ;;  %537 = vmatpush.msrb.mxu1 %v2027_v8  ;;  %v88_v8 = vld [vmem:[%s3477_s4 + $0x10] sm:$0xff] }
  0x38   :  { %380 = vmatpush.msrb.mxu3 %v2308_v17  ;;  %164 = vmatmul.f32.gmra.mxu0 %v2319_v20 }
  0x39   :  { %401 = vmatpush.msrb.mxu0 %v2330_v22  ;;  %237 = vmatpush.msra.mxu2 %v94_v56 }
  0x3a   :  { %381 = vmatpush.msrb.mxu3 %v2325_v21  ;;  %538 = vmatpush.msrb.mxu1 %v2036_v10  ;;  %v462_v10 = vsel %vm1817_vm0, 1, %v3483_v13  ;;  %vm1844_vm0 = vcmp.gt.s32.totalorder %v2471_v7, 7 }
  0x3b   :  { %402 = vmatpush.msrb.mxu0 %v2346_v27  ;;  %238 = vmatpush.msra.mxu2 %v91_v5 }
  0x3c   :  { %382 = vmatpush.msrb.mxu3 %v2341_v25  ;;  %1850 = vset.pattern.permute.xlu0 %v3483_v13 }
  0x3d   :  { %403 = vmatpush.msrb.mxu0 %v2362_v31  ;;  %205 = vmatmul.f32.gmra.mxu1 %v2319_v20 }
  0x3e   :  { %383 = vmatpush.msrb.mxu3 %v2357_v30  ;;  %239 = vmatpush.msra.mxu2 %v88_v8 }
  0x3f   :  { %404 = vmatpush.msrb.mxu0 %v2378_v36  ;;  %464 = vperm.xlu0 %1850, %v462_v10  }
  0x40   :  { %384 = vmatpush.msrb.mxu3 %v2373_v34  ;;  %167 = vmatmul.f32.gmra.mxu0 %v2385_v37 }
  0x41   :  { %405 = vmatpush.msrb.mxu0 %v2399_v44  ;;  %240 = vmatmul.f32.vlgmr.msra.gmra.mxu2 %v2168_v42 }
  0x42   :  { %385 = vmatpush.msrb.mxu3 %v2394_v40  ;;  %539 = vmatpush.msrb.mxu1 %v2045_v12  ;;  %v644_v12 = vsel %vm1820_vm1, 1, %v3483_v13 }
  0x43   :  { %406 = vmatpush.msrb.mxu0 %v2416_v6  ;;  %554 = vmatpush.msrb.mxu2 %v2178_v45 }
  0x44   :  { %386 = vmatpush.msrb.mxu3 %v2411_v48  ;;  %540 = vmatpush.msrb.mxu1 %v2054_v14  ;;  %v85_v14 = vld [vmem:[%s3475_s2 + $0x38] sm:$0xff] }
  0x45   :  { %407 = vmatpush.msrb.mxu0 %v2431_v55  ;;  %555 = vmatpush.msrb.mxu2 %v2197_v49 }
  0x46   :  { %387 = vmatpush.msrb.mxu3 %v2426_v52  ;;  %541 = vmatpush.msrb.mxu1 %v2063_v16 }
  0x47   :  { %408 = vmatpush.msrb.mxu0 %v2447_v63  ;;  %556 = vmatpush.msrb.mxu2 %v2215_v53 }
  0x48   :  { %388 = vmatpush.msrb.mxu3 %v2442_v60  ;;  %170 = vmatmul.f32.gmra.mxu0 %v2454_v0 }
  0x49   :  { %389 = vmatmul.f32.vlgmr.msrb.gmra.mxu3 %v2170_v43  ;;  %717 = vmatpush.msra.mxu0 %v2001_v2  ;;  %v2505_v2 = vld [vmem:[%s3475_s2 + $0x30] sm:$0xff] }
  0x4a   :  { %574 = vmatpush.msra.mxu3 %v2183_v46  ;;  %208 = vmatmul.f32.gmra.mxu1 %v2385_v37 }
  0x4b   :  { %718 = vmatpush.msra.mxu0 %v2010_v4  ;;  %646 = vperm.xlu0 %1850, %v644_v12   ;;  %v1559_v4 = vsel %vm1840_vm2, 1, %v3483_v13 }
  0x4c   :  { %575 = vmatpush.msra.mxu3 %v2202_v50  ;;  %557 = vmatpush.msrb.mxu2 %v2233_v57 }
  0x4d   :  { %243 = vmatmul.f32.gmra.mxu2 %v2244_v59  ;;  %542 = vmatpush.msrb.mxu1 %v2075_v19  ;;  %v134_v19 = vld [vmem:[%s3478_s5] sm:$0x7] }
  0x4e   :  { %576 = vmatpush.msra.mxu3 %v2220_v54  ;;  %558 = vmatpush.msrb.mxu2 %v2253_v61 }
  0x4f   :  { %543 = vmatpush.msrb.mxu1 %v2090_v23  ;;  %1851 = vset.pattern.permute.xlu1 %v3483_v13  ;;  %v2593_v23 = vld [vmem:[%s3480_s7] sm:$0x7] }
  0x50   :  { %173 = vmatmul.f32.gmra.mxu0 %v2483_v15  ;;  %577 = vmatpush.msra.mxu3 %v2238_v58  ;;  %v349_v56 = vperm.slane %v2593_v23, 2 }
  0x51   :  { %559 = vmatpush.msrb.mxu2 %v2272_v1  ;;  %544 = vmatpush.msrb.mxu1 %v2102_v26  ;;  %v136_v26 = vperm.slane %v134_v19, 0 }
  0x52   :  { %578 = vmatpush.msra.mxu3 %v2258_v62  ;;  %211 = vmatmul.f32.gmra.mxu1 %v2454_v0 }
  0x53   :  { %560 = vmatpush.msrb.mxu2 %v2290_v9  ;;  %1852 = vset.pattern.permute.xlu2 %v3483_v13 }
  0x54   :  { %579 = vmatpush.msra.mxu3 %v2277_v3  ;;  %1561 = vperm.xlu0 %1850, %v1559_v4  }
  0x55   :  { %561 = vmatpush.msrb.mxu2 %v2308_v17  ;;  %545 = vmatpush.msrb.mxu1 %v2114_v29 }
  0x56   :  { %580 = vmatpush.msra.mxu3 %v2295_v11  ;;  %246 = vmatmul.f32.gmra.mxu2 %v2319_v20 }
  0x57   :  { %562 = vmatpush.msrb.mxu2 %v2325_v21  ;;  %546 = vmatpush.msrb.mxu1 %v2126_v32  ;;  %v347_v32 = vperm.slane %v2593_v23, 0 }
  0x58   :  { %176 = vmatmul.f32.gmra.mxu0 %v2505_v2  ;;  %581 = vmatpush.msra.mxu3 %v2313_v18 }
  0x59   :  { %563 = vmatpush.msrb.mxu2 %v2341_v25  ;;  %547 = vmatpush.msrb.mxu1 %v2138_v35 }
  0x5a   :  { %582 = vmatpush.msra.mxu3 %v2330_v22  ;;  %214 = vmatmul.f32.gmra.mxu1 %v2483_v15 }
  0x5b   :  { %564 = vmatpush.msrb.mxu2 %v2357_v30  ;;  %548 = vmatpush.msrb.mxu1 %v2150_v38 }
  0x5c   :  { %583 = vmatpush.msra.mxu3 %v2346_v27 }
  0x5d   :  { %565 = vmatpush.msrb.mxu2 %v2373_v34  ;;  %549 = vmatpush.msrb.mxu1 %v2162_v41 }
  0x5e   :  { %584 = vmatpush.msra.mxu3 %v2362_v31  ;;  %249 = vmatmul.f32.gmra.mxu2 %v2385_v37 }
  0x5f   :  { %566 = vmatpush.msrb.mxu2 %v2394_v40  ;;  %737 = vmatpush.msra.mxu1 %v2178_v45 }
  0x60   :  { %179 = vmatmul.f32.gmra.mxu0 %v85_v14  ;;  %585 = vmatpush.msra.mxu3 %v2378_v36 }
  0x61   :  { %567 = vmatpush.msrb.mxu2 %v2411_v48  ;;  %738 = vmatpush.msra.mxu1 %v2197_v49 }
  0x62   :  { %586 = vmatpush.msra.mxu3 %v2399_v44  ;;  %217 = vmatmul.f32.gmra.mxu1 %v2505_v2 }
  0x63   :  { %568 = vmatpush.msrb.mxu2 %v2426_v52  ;;  %739 = vmatpush.msra.mxu1 %v2215_v53 }
  0x64   :  { %587 = vmatpush.msra.mxu3 %v2416_v6 }
  0x65   :  { %569 = vmatpush.msrb.mxu2 %v2442_v60  ;;  %740 = vmatpush.msra.mxu1 %v2233_v57 }
  0x66   :  { %588 = vmatpush.msra.mxu3 %v2431_v55  ;;  %252 = vmatmul.f32.gmra.mxu2 %v2454_v0 }
  0x67   :  { %757 = vmatpush.msra.mxu2 %v2183_v46  ;;  %741 = vmatpush.msra.mxu1 %v2253_v61  ;;  %v2604_v61 = vperm.slane %v134_v19, 1 }
  0x68   :  { %409 = vmatmul.f32.vlgmr.msrb.gmra.mxu0 %v2170_v43  ;;  %589 = vmatpush.msra.mxu3 %v2447_v63 }
  0x69   :  { %758 = vmatpush.msra.mxu2 %v2202_v50  ;;  %742 = vmatpush.msra.mxu1 %v2272_v1 }
  0x6a   :  { %220 = vmatmul.f32.gmra.mxu1 %v85_v14 }
  0x6b   :  { %759 = vmatpush.msra.mxu2 %v2220_v54  ;;  %743 = vmatpush.msra.mxu1 %v2290_v9 }
  0x6d   :  { %760 = vmatpush.msra.mxu2 %v2238_v58  ;;  %744 = vmatpush.msra.mxu1 %v2308_v17 }
  0x6e   :  { %255 = vmatmul.f32.gmra.mxu2 %v2483_v15 }
  0x6f   :  { %761 = vmatpush.msra.mxu2 %v2258_v62  ;;  %745 = vmatpush.msra.mxu1 %v2325_v21 }
  0x71   :  { %762 = vmatpush.msra.mxu2 %v2277_v3  ;;  %746 = vmatpush.msra.mxu1 %v2341_v25  ;;  %v348_v3 = vperm.slane %v2593_v23, 1 }
  0x73   :  { %763 = vmatpush.msra.mxu2 %v2295_v11  ;;  %747 = vmatpush.msra.mxu1 %v2357_v30 }
  0x75   :  { %764 = vmatpush.msra.mxu2 %v2313_v18  ;;  %748 = vmatpush.msra.mxu1 %v2373_v34  ;;  %v2612_v34 = vperm.slane %v134_v19, 2 }
  0x76   :  { %258 = vmatmul.f32.gmra.mxu2 %v2505_v2 }
  0x77   :  { %765 = vmatpush.msra.mxu2 %v2330_v22  ;;  %749 = vmatpush.msra.mxu1 %v2394_v40  ;;  %3490 = vst [vmem:[#allocation10_spill] sm:$0xff] %v2612_v34 }
  0x79   :  { %766 = vmatpush.msra.mxu2 %v2346_v27  ;;  %750 = vmatpush.msra.mxu1 %v2411_v48 }
  0x7b   :  { %767 = vmatpush.msra.mxu2 %v2362_v31  ;;  %751 = vmatpush.msra.mxu1 %v2426_v52 }
  0x7d   :  { %768 = vmatpush.msra.mxu2 %v2378_v36  ;;  %752 = vmatpush.msra.mxu1 %v2442_v60 }
  0x7e   :  { %261 = vmatmul.f32.gmra.mxu2 %v85_v14 }
  0x7f   :  { %769 = vmatpush.msra.mxu2 %v2399_v44 }
  0x81   :  { %770 = vmatpush.msra.mxu2 %v2416_v6 }
  0x83   :  { %771 = vmatpush.msra.mxu2 %v2431_v55 }
  0x85   :  { %772 = vmatpush.msra.mxu2 %v2447_v63 }
  0xa5   :  { %v159_v16 = vpop.f32.mrf.mxu0 }
  0xa6   :  { %v160_v42 = vadd.f32 %v159_v16, %v136_v26 }
  0xaa   :  { %v200_v1 = vpop.f32.mrf.mxu1 }
  0xab   :  { %v201_v9 = vadd.f32 %v200_v1, %v2604_v61 }
  0xac   :  { %v370_v38 = vpop.f32.mrf.mxu3 }
  0xad   :  { %v162_v29 = vpop.f32.mrf.mxu0  ;;  %v371_v41 = vadd.f32 %v370_v38, %v347_v32 }
  0xae   :  { %v2596_v35 = vadd.f32 %v162_v29, %v136_v26 }
  0xaf   :  { %v413_v46 = vadd.f32 %v371_v41, %v160_v42 }
  0xb1   :  { %v1815_v50 = vmul.f32 -1.442695, %v413_v46 }
  0xb3   :  { %1853 = vpow2.f32 %v1815_v50 }
  0xb5   :  { %v165_v45 = vpop.f32.mrf.mxu0 }
  0xb6   :  { %v2598_v49 = vadd.f32 %v165_v45, %v136_v26 }
  0xb9   :  { %v1854_v57 = vpop.eup %1853 }
  0xba   :  { %v417_v62 = vadd.f32 1.0, %v1854_v57  ;;  %v465_v57 = vpop.permute.xlu0 %464 }
  0xbb   :  { %vm466_vm11 = vcmp.eq.s32.totalorder %v465_v57, 1 }
  0xbc   :  { %1855 = vrcp.f32 %v417_v62  ;;  %vm423_vm4 = vweird.f32 %v417_v62  ;;  %v429_v51 = vand.u32 2147483648, %v417_v62  ;;  %v427_v60 = vand.u32 2147483647, %v417_v62 }
  0xbd   :  { %v168_v53 = vpop.f32.mrf.mxu0 }
  0xbe   :  { %v2600_v54 = vadd.f32 %v168_v53, %v136_v26  ;;  %v430_v10 = vor.u32 1.1754944e-38, %v429_v51  ;;  %vm428_vm6 = vcmp.eq.f32.partialorder %v427_v60, 8.507059e+37  ;;  %v2693_v51 = vld [vmem:[%s3479_s6 + $0xd8] sm:$0xff]  ;;  %v2705_v60 = vld [vmem:[%s3479_s6 + $0xa8] sm:$0xff] }
  0xc0   :  { %3486 = vst [vmem:[#allocation6_spill] sm:$0xff] %v2600_v54 }
  0xc2   :  { %v1856_v24 = vpop.eup %1855 }
  0xc3   :  { %v419_v27 = vmul.f32 %v1856_v24, %v417_v62  ;;  %vm424_vm3 = vweird.f32 %v1856_v24 }
  0xc4   :  { %v241_v25 = vpop.f32.mrf.mxu2  ;;  %vm425_vm5 = vmor %vm423_vm4, %vm424_vm3 }
  0xc5   :  { %v171_v58 = vpop.f32.mrf.mxu0  ;;  %v420_v33 = vsub.f32 1.0, %v419_v27  ;;  %v242_v2 = vadd.f32 %v241_v25, %v2612_v34 }
  0xc6   :  { %v2602_v59 = vadd.f32 %v171_v58, %v136_v26 }
  0xc7   :  { %v421_v40 = vmul.f32 %v1856_v24, %v420_v33  ;;  %v2661_v33 = vld [vmem:[%s3479_s6 + $0x138] sm:$0xff] }
  0xc8   :  { %3487 = vst [vmem:[#allocation7_spill] sm:$0xff] %v2602_v59  ;;  %719 = vmatpush.msra.mxu0 %v2661_v33 }
  0xc9   :  { %v422_v48 = vadd.f32 %v1856_v24, %v421_v40  ;;  %v2678_v40 = vld [vmem:[%s3479_s6 + $0x108] sm:$0xff] }
  0xcb   :  { %v426_v5 = vsel %vm425_vm5, %v1856_v24, %v422_v48  ;;  %v2686_v48 = vld [vmem:[%s3479_s6 + $0xf0] sm:$0xff] }
  0xcc   :  { %v390_v11 = vpop.f32.mrf.mxu3  ;;  %v431_v4 = vsel %vm428_vm6, %v430_v10, %v426_v5 }
  0xcd   :  { %v391_v17 = vadd.f32 %v390_v11, %v348_v3  ;;  %v174_v18 = vpop.f32.mrf.mxu0 }
  0xce   :  { %v2608_v21 = vadd.f32 %v174_v18, %v136_v26 }
  0xcf   :  { %v433_v20 = vadd.f32 %v391_v17, %v201_v9 }
  0xd0   :  { %3488 = vst [vmem:[#allocation8_spill] sm:$0xff] %v2608_v21  ;;  %v244_v37 = vpop.f32.mrf.mxu2 }
  0xd1   :  { %v1816_v22 = vmul.f32 -1.442695, %v433_v20  ;;  %v2615_v39 = vadd.f32 %v244_v37, %v2612_v34  ;;  %v2673_v37 = vld [vmem:[%s3480_s7] sm:$0x7] }
  0xd2   :  { %v529_v5 = vperm.slane %v2673_v37, 1 }
  0xd3   :  { %1857 = vpow2.f32 %v1816_v22 }
  0xd5   :  { %v177_v28 = vpop.f32.mrf.mxu0 }
  0xd6   :  { %v2610_v30 = vadd.f32 %v177_v28, %v136_v26 }
  0xd8   :  { %3489 = vst [vmem:[#allocation9_spill] sm:$0xff] %v2610_v30 }
  0xd9   :  { %v1858_v31 = vpop.eup %1857  ;;  %v247_v52 = vpop.f32.mrf.mxu2 }
  0xda   :  { %v437_v36 = vadd.f32 1.0, %v1858_v31  ;;  %v2621_v63 = vadd.f32 %v247_v52, %v2612_v34 }
  0xdc   :  { %1859 = vrcp.f32 %v437_v36  ;;  %vm443_vm7 = vweird.f32 %v437_v36  ;;  %v449_v14 = vand.u32 2147483648, %v437_v36  ;;  %v447_v23 = vand.u32 2147483647, %v437_v36 }
  0xdd   :  { %v180_v44 = vpop.f32.mrf.mxu0 }
  0xde   :  { %v2617_v47 = vadd.f32 %v180_v44, %v136_v26  ;;  %v450_v41 = vor.u32 1.1754944e-38, %v449_v14  ;;  %vm448_vm10 = vcmp.eq.f32.partialorder %v447_v23, 8.507059e+37  ;;  %v2738_v23 = vld [vmem:[%s3479_s6 + $0x30] sm:$0xff] }
  0xe0   :  { %3491 = vst [vmem:[#allocation11_spill] sm:$0xff] %v2617_v47 }
  0xe1   :  { %v250_v26 = vpop.f32.mrf.mxu2 }
  0xe2   :  { %v1860_v6 = vpop.eup %1859  ;;  %v2625_v32 = vadd.f32 %v250_v26, %v2612_v34 }
  0xe3   :  { %v439_v55 = vmul.f32 %v1860_v6, %v437_v36  ;;  %vm444_vm8 = vweird.f32 %v1860_v6  ;;  %v2667_v36 = vld [vmem:[%s3479_s6 + $0x120] sm:$0xff] }
  0xe4   :  { %vm445_vm9 = vmor %vm443_vm7, %vm444_vm8  ;;  %3492 = vst [vmem:[#allocation12_spill] sm:$0xff] %v2625_v32  ;;  %720 = vmatpush.msra.mxu0 %v2667_v36 }
  0xe5   :  { %v440_v0 = vsub.f32 1.0, %v439_v55  ;;  %v410_v8 = vpop.f32.mrf.mxu0  ;;  %v2699_v55 = vld [vmem:[%s3479_s6 + $0xc0] sm:$0xff] }
  0xe6   :  { %v411_v12 = vadd.f32 %v410_v8, %v349_v56  ;;  %721 = vmatpush.msra.mxu0 %v2678_v40  ;;  %v2713_v8 = vld [vmem:[%s3479_s6 + $0x90] sm:$0xff] }
  0xe7   :  { %v441_v15 = vmul.f32 %v1860_v6, %v440_v0 }
  0xe8   :  { %v453_v16 = vmul.f32 %v431_v4, %v411_v12  ;;  %722 = vmatpush.msra.mxu0 %v2686_v48  ;;  %v2719_v12 = vld [vmem:[%s3479_s6 + $0x78] sm:$0xff]  ;;  %v2726_v4 = vld [vmem:[%s3479_s6 + $0x60] sm:$0xff] }
  0xe9   :  { %v442_v19 = vadd.f32 %v1860_v6, %v441_v15  ;;  %v253_v46 = vpop.f32.mrf.mxu2 }
  0xea   :  { %v454_v29 = vadd.f32 %v453_v16, %v242_v2  ;;  %v2628_v53 = vadd.f32 %v253_v46, %v2612_v34  ;;  %723 = vmatpush.msra.mxu0 %v2693_v51  ;;  %v2732_v16 = vld [vmem:[%s3479_s6 + $0x48] sm:$0xff] }
  0xeb   :  { %v446_v38 = vsel %vm445_vm9, %v1860_v6, %v442_v19  ;;  %v528_v6 = vperm.slane %v2673_v37, 0 }
  0xec   :  { %1861 = vtanh.f32 %v454_v29  ;;  %v451_v42 = vsel %vm448_vm10, %v450_v41, %v446_v38  ;;  %3493 = vst [vmem:[#allocation13_spill] sm:$0xff] %v2628_v53  ;;  %724 = vmatpush.msra.mxu0 %v2699_v55  ;;  %v2744_v38 = vld [vmem:[%s3479_s6 + $0x18] sm:$0xff]  ;;  %v2750_v41 = vld [vmem:[%s3479_s6] sm:$0xff] }
  0xed   :  { %v456_v45 = vsub.f32 1.0, %v451_v42  ;;  %v458_v62 = vmul.f32 %v451_v42, %v2170_v43 }
  0xee   :  { %725 = vmatpush.msra.mxu0 %v2705_v60 }
  0xf0   :  { %726 = vmatpush.msra.mxu0 %v2713_v8 }
  0xf1   :  { %v256_v11 = vpop.f32.mrf.mxu2 }
  0xf2   :  { %v1862_v50 = vpop.eup %1861  ;;  %v2641_v17 = vadd.f32 %v256_v11, %v2612_v34  ;;  %727 = vmatpush.msra.mxu0 %v2719_v12 }
  0xf3   :  { %v457_v58 = vmul.f32 %v1862_v50, %v456_v45  ;;  %v827_v45 = vsel %vm1824_vm12, 1, %v3483_v13 }
  0xf4   :  { %3494 = vst [vmem:[#allocation14_spill] sm:$0xff] %v2641_v17  ;;  %728 = vmatpush.msra.mxu0 %v2726_v4  ;;  %829 = vperm.xlu1 %1851, %v827_v45  }
  0xf5   :  { %v459_v1 = vadd.f32 %v458_v62, %v457_v58  ;;  %v1010_v62 = vsel %vm1828_vm13, 1, %v3483_v13 }
  0xf6   :  { %729 = vmatpush.msra.mxu0 %v2732_v16 }
  0xf7   :  { %v467_v3 = vsel %vm466_vm11, %v459_v1, 0.0  ;;  %v2632_v9 = vsel %vm466_vm11, %v459_v1, %v2170_v43  ;;  %v203_v43 = vpop.f32.mrf.mxu1 }
  0xf8   :  { %468 = vst [vmem:[%s3481_s8] sm:$0xff] %v467_v3  ;;  %550 = vmatmul.f32.vlgmr.msrb.gmra.mxu1 %v2632_v9  ;;  %570 = vmatmul.f32.vlgmr.msrb.gmra.mxu2 %v2632_v9  ;;  %v530_v3 = vperm.slane %v2673_v37, 2  ;;  %v1742_v37 = vsel %vm1844_vm0, 1, %v3483_v13  ;;  %v2980_v13 = vld [vmem:[%s3479_s6 + $0x40] sm:$0xff] }
  0xf9   :  { %590 = vmatmul.f32.vlgmr.msra.gmra.mxu3 %v2632_v9  ;;  %v259_v18 = vpop.f32.mrf.mxu2  ;;  %730 = vmatpush.msra.mxu0 %v2738_v23 }
  0xfa   :  { %v2644_v20 = vadd.f32 %v259_v18, %v2612_v34 }
  0xfb   :  { %731 = vmatpush.msra.mxu0 %v2744_v38 }
  0xfc   :  { %3495 = vst [vmem:[#allocation15_spill] sm:$0xff] %v2644_v20  ;;  %1012 = vperm.xlu1 %1851, %v1010_v62   ;;  %v2994_v20 = vld [vmem:[%s3479_s6 + $0x28] sm:$0xff] }
  0xfd   :  { %732 = vmatpush.msra.mxu0 %v2750_v41 }
  0xff   :  { %v2646_v22 = vpop.f32.mrf.mxu1 }
 0x101   :  { %v2681_v44 = vpop.f32.mrf.mxu2 }
 0x102   :  { %3501 = vst [vmem:[#allocation21_spill] sm:$0xff] %v2681_v44 }
 0x104   :  { %1744 = vperm.xlu1 %1851, %v1742_v37   ;;  %v2844_v37 = vld [vmem:[%s3479_s6 + $0x110] sm:$0xff] }
 0x107   :  { %v2648_v24 = vpop.f32.mrf.mxu1 }
 0x108   :  { %3496 = vst [vmem:[#allocation16_spill] sm:$0xff] %v2648_v24 }
 0x10f   :  { %v2650_v25 = vpop.f32.mrf.mxu1 }
 0x110   :  { %3497 = vst [vmem:[#allocation17_spill] sm:$0xff] %v2650_v25 }
 0x117   :  { %v2652_v27 = vpop.f32.mrf.mxu1 }
 0x118   :  { %3498 = vst [vmem:[#allocation18_spill] sm:$0xff] %v2652_v27 }
 0x11f   :  { %v2654_v28 = vpop.f32.mrf.mxu1 }
 0x120   :  { %3499 = vst [vmem:[#allocation19_spill] sm:$0xff] %v2654_v28  ;;  %v3010_v28 = vld [vmem:[%s3479_s6 + $0x10] sm:$0xff] }
 0x127   :  { %v2656_v31 = vpop.f32.mrf.mxu1 }
 0x128   :  { %3500 = vst [vmem:[#allocation20_spill] sm:$0xff] %v2656_v31  ;;  %v2989_v31 = vld [vmem:[%s3479_s6 + $0x20] sm:$0xff] }
 0x175   :  { %v551_v52 = vpop.f32.mrf.mxu1 }
 0x176   :  { %v552_v56 = vadd.f32 %v551_v52, %v528_v6 }
 0x178   :  { %v594_v0 = vadd.f32 %v552_v56, %v2596_v35  ;;  %v204_v35 = vadd.f32 %v203_v43, %v2604_v61 }
 0x17a   :  { %v1818_v10 = vmul.f32 -1.442695, %v594_v0 }
 0x17b   :  { %v571_v15 = vpop.f32.mrf.mxu2 }
 0x17c   :  { %1863 = vpow2.f32 %v1818_v10  ;;  %v572_v2 = vadd.f32 %v571_v15, %v529_v5  ;;  %v591_v6 = vpop.f32.mrf.mxu3 }
 0x17d   :  { %v592_v10 = vadd.f32 %v591_v6, %v530_v3  ;;  %v647_v3 = vpop.permute.xlu0 %646  ;;  %v2792_v6 = vld [vmem:[%s3479_s6 + $0x150] sm:$0xff] }
 0x17e   :  { %v614_v14 = vadd.f32 %v572_v2, %v204_v35  ;;  %vm648_vm7 = vcmp.eq.s32.totalorder %v647_v3, 1 }
 0x180   :  { %v1819_v19 = vmul.f32 -1.442695, %v614_v14 }
 0x182   :  { %v1864_v26 = vpop.eup %1863  ;;  %1865 = vpow2.f32 %v1819_v19 }
 0x183   :  { %v598_v29 = vadd.f32 1.0, %v1864_v26 }
 0x185   :  { %1867 = vrcp.f32 %v598_v29  ;;  %v610_v1 = vand.u32 2147483648, %v598_v29  ;;  %v608_v18 = vand.u32 2147483647, %v598_v29  ;;  %vm604_vm15 = vweird.f32 %v598_v29 }
 0x187   :  { %v611_v0 = vor.u32 1.1754944e-38, %v610_v1  ;;  %vm609_vm2 = vcmp.eq.f32.partialorder %v608_v18, 8.507059e+37 }
 0x188   :  { %v1866_v42 = vpop.eup %1865 }
 0x189   :  { %v618_v46 = vadd.f32 1.0, %v1866_v42 }
 0x18b   :  { %v1868_v50 = vpop.eup %1867  ;;  %1869 = vrcp.f32 %v618_v46  ;;  %v630_v14 = vand.u32 2147483648, %v618_v46  ;;  %v628_v26 = vand.u32 2147483647, %v618_v46  ;;  %vm624_vm4 = vweird.f32 %v618_v46 }
 0x18c   :  { %v600_v57 = vmul.f32 %v1868_v50, %v598_v29  ;;  %vm605_vm14 = vweird.f32 %v1868_v50 }
 0x18d   :  { %vm606_vm1 = vmor %vm604_vm15, %vm605_vm14  ;;  %v631_v7 = vor.u32 1.1754944e-38, %v630_v14  ;;  %vm629_vm6 = vcmp.eq.f32.partialorder %v628_v26, 8.507059e+37  ;;  %v2858_v14 = vld [vmem:[%s3479_s6 + $0xf8] sm:$0xff] }
 0x18e   :  { %v601_v58 = vsub.f32 1.0, %v600_v57 }
 0x190   :  { %v602_v11 = vmul.f32 %v1868_v50, %v601_v58 }
 0x191   :  { %v1870_v43 = vpop.eup %1869 }
 0x192   :  { %v620_v52 = vmul.f32 %v1870_v43, %v618_v46  ;;  %v603_v56 = vadd.f32 %v1868_v50, %v602_v11  ;;  %vm625_vm3 = vweird.f32 %v1870_v43 }
 0x193   :  { %vm626_vm5 = vmor %vm624_vm4, %vm625_vm3 }
 0x194   :  { %v621_v5 = vsub.f32 1.0, %v620_v52  ;;  %v607_v15 = vsel %vm606_vm1, %v1868_v50, %v603_v56  ;;  %v2797_v52 = vld [vmem:[%s3479_s6 + $0x158] sm:$0xff]  ;;  %v2802_v56 = vld [vmem:[%s3479_s6 + $0x160] sm:$0xff] }
 0x195   :  { %v612_v35 = vsel %vm609_vm2, %v611_v0, %v607_v15  ;;  %v2811_v0 = vld [vmem:[%s3479_s6 + $0x140] sm:$0xff]  ;;  %v2830_v15 = vld [vmem:[%s3479_s6 + $0x130] sm:$0xff] }
 0x196   :  { %v622_v2 = vmul.f32 %v1870_v43, %v621_v5  ;;  %v634_v19 = vmul.f32 %v612_v35, %v592_v10  ;;  %v2816_v5 = vld [vmem:[%s3479_s6 + $0x148] sm:$0xff]  ;;  %v2838_v35 = vld [vmem:[%s3480_s7] sm:$0x7] }
 0x197   :  { %v2825_v10 = vld [vmem:[%s3479_s6 + $0x128] sm:$0xff]  ;;  %v711_v26 = vperm.slane %v2838_v35, 0  ;;  %v713_v32 = vperm.slane %v2838_v35, 2 }
 0x198   :  { %v623_v42 = vadd.f32 %v1870_v43, %v622_v2  ;;  %v635_v29 = vadd.f32 %v634_v19, %v2615_v39  ;;  %v2774_v39 = vld [vmem:[%s3479_s6 + $0x168] sm:$0xff]  ;;  %v2849_v2 = vld [vmem:[%s3479_s6 + $0x118] sm:$0xff]  ;;  %v2863_v19 = vld [vmem:[%s3479_s6 + $0x100] sm:$0xff] }
 0x199   :  { %900 = vmatpush.msrb.mxu3 %v2774_v39  ;;  %1083 = vmatpush.msrb.mxu2 %v2774_v39 }
 0x19a   :  { %v627_v45 = vsel %vm626_vm5, %v1870_v43, %v623_v42  ;;  %1871 = vtanh.f32 %v635_v29  ;;  %v2784_v43 = vld [vmem:[%s3479_s6 + $0x178] sm:$0xff]  ;;  %v712_v42 = vperm.slane %v2838_v35, 1  ;;  %v2874_v29 = vld [vmem:[%s3479_s6 + $0xe0] sm:$0xff] }
 0x19b   :  { %v632_v50 = vsel %vm629_vm6, %v631_v7, %v627_v45  ;;  %940 = vmatpush.msrb.mxu1 %v2784_v43  ;;  %901 = vmatpush.msrb.mxu3 %v2792_v6  ;;  %v2879_v7 = vld [vmem:[%s3479_s6 + $0xe8] sm:$0xff] }
 0x19c   :  { %v637_v57 = vsub.f32 1.0, %v632_v50  ;;  %v639_v1 = vmul.f32 %v632_v50, %v2632_v9  ;;  %1084 = vmatpush.msrb.mxu2 %v2792_v6 }
 0x19d   :  { %941 = vmatpush.msrb.mxu1 %v2802_v56  ;;  %902 = vmatpush.msrb.mxu3 %v2661_v33 }
 0x19e   :  { %1085 = vmatpush.msrb.mxu2 %v2661_v33 }
 0x19f   :  { %942 = vmatpush.msrb.mxu1 %v2816_v5  ;;  %903 = vmatpush.msrb.mxu3 %v2667_v36 }
 0x1a0   :  { %v1872_v58 = vpop.eup %1871  ;;  %1086 = vmatpush.msrb.mxu2 %v2667_v36 }
 0x1a1   :  { %v638_v62 = vmul.f32 %v1872_v58, %v637_v57  ;;  %943 = vmatpush.msrb.mxu1 %v2830_v15  ;;  %904 = vmatpush.msrb.mxu3 %v2678_v40  ;;  %v2888_v57 = vld [vmem:[%s3479_s6 + $0xc8] sm:$0xff]  ;;  %v2893_v58 = vld [vmem:[%s3479_s6 + $0xd0] sm:$0xff] }
 0x1a2   :  { %1087 = vmatpush.msrb.mxu2 %v2678_v40 }
 0x1a3   :  { %v640_v11 = vadd.f32 %v639_v1, %v638_v62  ;;  %944 = vmatpush.msrb.mxu1 %v2849_v2  ;;  %905 = vmatpush.msrb.mxu3 %v2686_v48  ;;  %v207_v62 = vadd.f32 %v2646_v22, %v2604_v61 }
 0x1a4   :  { %1088 = vmatpush.msrb.mxu2 %v2686_v48 }
 0x1a5   :  { %v649_v18 = vsel %vm648_vm7, %v640_v11, 0.0  ;;  %v2763_v46 = vsel %vm648_vm7, %v640_v11, %v2632_v9  ;;  %v2779_v9 = vld [vmem:[%s3479_s6 + $0x170] sm:$0xff]  ;;  %945 = vmatpush.msrb.mxu1 %v2863_v19  ;;  %906 = vmatpush.msrb.mxu3 %v2693_v51 }
 0x1a6   :  { %1821 = vst [vmem:[%s3481_s8 + $0x8] sm:$0xff] %v649_v18  ;;  %733 = vmatmul.f32.vlgmr.msra.gmra.mxu0 %v2763_v46  ;;  %753 = vmatmul.f32.vlgmr.msra.gmra.mxu1 %v2763_v46  ;;  %v2904_v11 = vld [vmem:[%s3479_s6 + $0xb0] sm:$0xff]  ;;  %v2909_v18 = vld [vmem:[%s3479_s6 + $0xb8] sm:$0xff] }
 0x1a7   :  { %773 = vmatmul.f32.vlgmr.msra.gmra.mxu2 %v2763_v46  ;;  %920 = vmatpush.msrb.mxu0 %v2779_v9 }
 0x1a8   :  { %946 = vmatpush.msrb.mxu1 %v2879_v7  ;;  %1089 = vmatpush.msrb.mxu2 %v2693_v51 }
 0x1a9   :  { %921 = vmatpush.msrb.mxu0 %v2797_v52  ;;  %907 = vmatpush.msrb.mxu3 %v2699_v55 }
 0x1aa   :  { %947 = vmatpush.msrb.mxu1 %v2893_v58  ;;  %1090 = vmatpush.msrb.mxu2 %v2699_v55 }
 0x1ab   :  { %922 = vmatpush.msrb.mxu0 %v2811_v0  ;;  %908 = vmatpush.msrb.mxu3 %v2705_v60 }
 0x1ac   :  { %948 = vmatpush.msrb.mxu1 %v2909_v18  ;;  %1091 = vmatpush.msrb.mxu2 %v2705_v60 }
 0x1ad   :  { %923 = vmatpush.msrb.mxu0 %v2825_v10  ;;  %909 = vmatpush.msrb.mxu3 %v2713_v8 }
 0x1ae   :  { %1092 = vmatpush.msrb.mxu2 %v2713_v8 }
 0x1af   :  { %924 = vmatpush.msrb.mxu0 %v2844_v37  ;;  %910 = vmatpush.msrb.mxu3 %v2719_v12 }
 0x1b0   :  { %1093 = vmatpush.msrb.mxu2 %v2719_v12 }
 0x1b1   :  { %925 = vmatpush.msrb.mxu0 %v2858_v14  ;;  %911 = vmatpush.msrb.mxu3 %v2726_v4 }
 0x1b2   :  { %1094 = vmatpush.msrb.mxu2 %v2726_v4 }
 0x1b3   :  { %926 = vmatpush.msrb.mxu0 %v2874_v29  ;;  %912 = vmatpush.msrb.mxu3 %v2732_v16 }
 0x1b4   :  { %1095 = vmatpush.msrb.mxu2 %v2732_v16 }
 0x1b5   :  { %927 = vmatpush.msrb.mxu0 %v2888_v57  ;;  %913 = vmatpush.msrb.mxu3 %v2738_v23 }
 0x1b6   :  { %1096 = vmatpush.msrb.mxu2 %v2738_v23 }
 0x1b7   :  { %928 = vmatpush.msrb.mxu0 %v2904_v11  ;;  %914 = vmatpush.msrb.mxu3 %v2744_v38 }
 0x1b8   :  { %1097 = vmatpush.msrb.mxu2 %v2744_v38 }
 0x1b9   :  { %915 = vmatpush.msrb.mxu3 %v2750_v41 }
 0x1ba   :  { %1098 = vmatpush.msrb.mxu2 %v2750_v41 }
 0x1bb   :  { %1103 = vmatpush.msra.mxu3 %v2779_v9 }
 0x1bc   :  { %1286 = vmatpush.msra.mxu2 %v2779_v9 }
 0x1bd   :  { %1104 = vmatpush.msra.mxu3 %v2797_v52 }
 0x1be   :  { %1287 = vmatpush.msra.mxu2 %v2797_v52 }
 0x1bf   :  { %1105 = vmatpush.msra.mxu3 %v2811_v0 }
 0x1c0   :  { %1288 = vmatpush.msra.mxu2 %v2811_v0 }
 0x1c1   :  { %1106 = vmatpush.msra.mxu3 %v2825_v10 }
 0x1c2   :  { %1289 = vmatpush.msra.mxu2 %v2825_v10 }
 0x1c3   :  { %1107 = vmatpush.msra.mxu3 %v2844_v37 }
 0x1c4   :  { %1290 = vmatpush.msra.mxu2 %v2844_v37 }
 0x1c5   :  { %1108 = vmatpush.msra.mxu3 %v2858_v14 }
 0x1c6   :  { %1291 = vmatpush.msra.mxu2 %v2858_v14 }
 0x1c7   :  { %1109 = vmatpush.msra.mxu3 %v2874_v29 }
 0x1c8   :  { %1292 = vmatpush.msra.mxu2 %v2874_v29 }
 0x1c9   :  { %1110 = vmatpush.msra.mxu3 %v2888_v57 }
 0x1ca   :  { %1293 = vmatpush.msra.mxu2 %v2888_v57 }
 0x1cb   :  { %1111 = vmatpush.msra.mxu3 %v2904_v11 }
 0x1cc   :  { %1294 = vmatpush.msra.mxu2 %v2904_v11 }
 0x223   :  { %v734_v45 = vpop.f32.mrf.mxu0  ;;  %v754_v50 = vpop.f32.mrf.mxu1 }
 0x224   :  { %v735_v1 = vadd.f32 %v734_v45, %v711_v26  ;;  %v755_v3 = vadd.f32 %v754_v50, %v712_v42  ;;  %v2919_v42 = vld [vmem:[%s3479_s6 + $0x98] sm:$0xff]  ;;  %v2924_v45 = vld [vmem:[%s3479_s6 + $0xa0] sm:$0xff] }
 0x225   :  { %929 = vmatpush.msrb.mxu0 %v2919_v42  ;;  %949 = vmatpush.msrb.mxu1 %v2924_v45 }
 0x226   :  { %v777_v22 = vadd.f32 %v735_v1, %v2598_v49  ;;  %v797_v26 = vadd.f32 %v755_v3, %v207_v62  ;;  %v2933_v62 = vld [vmem:[%s3479_s6 + $0x80] sm:$0xff]  ;;  %v2938_v1 = vld [vmem:[%s3479_s6 + $0x88] sm:$0xff]  ;;  %1112 = vmatpush.msra.mxu3 %v2919_v42  ;;  %1295 = vmatpush.msra.mxu2 %v2919_v42 }
 0x227   :  { %930 = vmatpush.msrb.mxu0 %v2933_v62  ;;  %950 = vmatpush.msrb.mxu1 %v2938_v1  ;;  %v2947_v3 = vld [vmem:[%s3479_s6 + $0x68] sm:$0xff] }
 0x228   :  { %v1822_v49 = vmul.f32 -1.442695, %v777_v22  ;;  %v1823_v50 = vmul.f32 -1.442695, %v797_v26  ;;  %v2952_v22 = vld [vmem:[%s3479_s6 + $0x70] sm:$0xff]  ;;  %1113 = vmatpush.msra.mxu3 %v2933_v62  ;;  %1296 = vmatpush.msra.mxu2 %v2933_v62 }
 0x229   :  { %931 = vmatpush.msrb.mxu0 %v2947_v3  ;;  %951 = vmatpush.msrb.mxu1 %v2952_v22  ;;  %v2961_v26 = vld [vmem:[%s3479_s6 + $0x50] sm:$0xff] }
 0x22a   :  { %1873 = vpow2.f32 %v1822_v49  ;;  %v2966_v49 = vld [vmem:[%s3479_s6 + $0x58] sm:$0xff]  ;;  %1114 = vmatpush.msra.mxu3 %v2947_v3  ;;  %1297 = vmatpush.msra.mxu2 %v2947_v3 }
 0x22b   :  { %1875 = vpow2.f32 %v1823_v50  ;;  %932 = vmatpush.msrb.mxu0 %v2961_v26  ;;  %952 = vmatpush.msrb.mxu1 %v2966_v49  ;;  %v2975_v50 = vld [vmem:[%s3479_s6 + $0x38] sm:$0xff] }
 0x22c   :  { %1115 = vmatpush.msra.mxu3 %v2961_v26  ;;  %1298 = vmatpush.msra.mxu2 %v2961_v26 }
 0x22d   :  { %933 = vmatpush.msrb.mxu0 %v2975_v50  ;;  %953 = vmatpush.msrb.mxu1 %v2980_v13 }
 0x22e   :  { %1116 = vmatpush.msra.mxu3 %v2975_v50  ;;  %1299 = vmatpush.msra.mxu2 %v2975_v50 }
 0x22f   :  { %934 = vmatpush.msrb.mxu0 %v2989_v31  ;;  %954 = vmatpush.msrb.mxu1 %v2994_v20 }
 0x230   :  { %v1874_v44 = vpop.eup %1873  ;;  %1117 = vmatpush.msra.mxu3 %v2989_v31  ;;  %1300 = vmatpush.msra.mxu2 %v2989_v31 }
 0x231   :  { %v1876_v34 = vpop.eup %1875  ;;  %v781_v47 = vadd.f32 1.0, %v1874_v44  ;;  %v3005_v44 = vld [vmem:[%s3479_s6 + $0x8] sm:$0xff]  ;;  %955 = vmatpush.msrb.mxu1 %v3010_v28 }
 0x232   :  { %v2997_v30 = vadd.f32 1.0, %v1876_v34  ;;  %935 = vmatpush.msrb.mxu0 %v3005_v44  ;;  %1118 = vmatpush.msra.mxu3 %v3005_v44 }
 0x233   :  { %1877 = vrcp.f32 %v781_v47  ;;  %1266 = vmatpush.msra.mxu1 %v2774_v39  ;;  %v793_v59 = vand.u32 2147483648, %v781_v47  ;;  %v791_v24 = vand.u32 2147483647, %v781_v47  ;;  %vm787_vm9 = vweird.f32 %v781_v47  ;;  %1301 = vmatpush.msra.mxu2 %v3005_v44 }
 0x234   :  { %1879 = vrcp.f32 %v2997_v30  ;;  %1123 = vmatpush.msra.mxu0 %v2784_v43  ;;  %vm807_vm13 = vweird.f32 %v2997_v30 }
 0x235   :  { %1267 = vmatpush.msra.mxu1 %v2792_v6  ;;  %vm792_vm11 = vcmp.eq.f32.partialorder %v791_v24, 8.507059e+37 }
 0x236   :  { %1124 = vmatpush.msra.mxu0 %v2802_v56 }
 0x237   :  { %1268 = vmatpush.msra.mxu1 %v2661_v33 }
 0x238   :  { %1125 = vmatpush.msra.mxu0 %v2816_v5 }
 0x239   :  { %v1878_v34 = vpop.eup %1877  ;;  %1269 = vmatpush.msra.mxu1 %v2667_v36 }
 0x23a   :  { %v3026_v17 = vpop.eup %1879  ;;  %v783_v27 = vmul.f32 %v1878_v34, %v781_v47  ;;  %1126 = vmatpush.msra.mxu0 %v2830_v15  ;;  %vm788_vm8 = vweird.f32 %v1878_v34  ;;  %v813_v47 = vand.u32 2147483648, %v2997_v30 }
 0x23b   :  { %v803_v21 = vmul.f32 %v3026_v17, %v2997_v30  ;;  %1270 = vmatpush.msra.mxu1 %v2678_v40  ;;  %vm789_vm10 = vmor %vm787_vm9, %vm788_vm8  ;;  %vm808_vm12 = vweird.f32 %v3026_v17 }
 0x23c   :  { %v784_v53 = vsub.f32 1.0, %v783_v27  ;;  %1127 = vmatpush.msra.mxu0 %v2849_v2  ;;  %v774_v27 = vpop.f32.mrf.mxu2  ;;  %vm809_vm14 = vmor %vm807_vm13, %vm808_vm12 }
 0x23d   :  { %v804_v25 = vsub.f32 1.0, %v803_v21  ;;  %1271 = vmatpush.msra.mxu1 %v2686_v48  ;;  %v775_v36 = vadd.f32 %v774_v27, %v713_v32  ;;  %v811_v32 = vand.u32 2147483647, %v2997_v30  ;;  %v814_v48 = vor.u32 1.1754944e-38, %v813_v47 }
 0x23e   :  { %v785_v54 = vmul.f32 %v1878_v34, %v784_v53  ;;  %1128 = vmatpush.msra.mxu0 %v2863_v19  ;;  %v794_v53 = vor.u32 1.1754944e-38, %v793_v59 }
 0x23f   :  { %v805_v33 = vmul.f32 %v3026_v17, %v804_v25  ;;  %1272 = vmatpush.msra.mxu1 %v2693_v51  ;;  %vm812_vm15 = vcmp.eq.f32.partialorder %v811_v32, 8.507059e+37  ;;  %v830_v51 = vpop.permute.xlu1 %829 }
 0x240   :  { %v786_v21 = vadd.f32 %v1878_v34, %v785_v54  ;;  %1129 = vmatpush.msra.mxu0 %v2879_v7  ;;  %vm831_vm0 = vcmp.eq.s32.totalorder %v830_v51, 1 }
 0x241   :  { %v806_v54 = vadd.f32 %v3026_v17, %v805_v33  ;;  %1273 = vmatpush.msra.mxu1 %v2699_v55 }
 0x242   :  { %v790_v35 = vsel %vm789_vm10, %v1878_v34, %v786_v21  ;;  %1130 = vmatpush.msra.mxu0 %v2893_v58 }
 0x243   :  { %v795_v25 = vsel %vm792_vm11, %v794_v53, %v790_v35  ;;  %v810_v40 = vsel %vm809_vm14, %v3026_v17, %v806_v54  ;;  %1274 = vmatpush.msra.mxu1 %v2705_v60 }
 0x244   :  { %v817_v59 = vmul.f32 %v795_v25, %v775_v36  ;;  %1131 = vmatpush.msra.mxu0 %v2909_v18  ;;  %v815_v30 = vsel %vm812_vm15, %v814_v48, %v810_v40 }
 0x245   :  { %1275 = vmatpush.msra.mxu1 %v2713_v8  ;;  %v822_v60 = vmul.f32 %v815_v30, %v2763_v46 }
 0x246   :  { %v818_v24 = vadd.f32 %v817_v59, %v2621_v63  ;;  %1132 = vmatpush.msra.mxu0 %v2924_v45  ;;  %v820_v63 = vsub.f32 1.0, %v815_v30 }
 0x247   :  { %1276 = vmatpush.msra.mxu1 %v2719_v12 }
 0x248   :  { %1881 = vtanh.f32 %v818_v24  ;;  %1133 = vmatpush.msra.mxu0 %v2938_v1 }
 0x249   :  { %1277 = vmatpush.msra.mxu1 %v2726_v4 }
 0x24a   :  { %1134 = vmatpush.msra.mxu0 %v2952_v22 }
 0x24b   :  { %1278 = vmatpush.msra.mxu1 %v2732_v16  ;;  %v892_v16 = vld [vmem:[%s3480_s7] sm:$0x7] }
 0x24c   :  { %1135 = vmatpush.msra.mxu0 %v2966_v49  ;;  %v896_v35 = vperm.slane %v892_v16, 2 }
 0x24d   :  { %1279 = vmatpush.msra.mxu1 %v2738_v23  ;;  %v895_v23 = vperm.slane %v892_v16, 1 }
 0x24e   :  { %v1882_v17 = vpop.eup %1881  ;;  %1136 = vmatpush.msra.mxu0 %v2980_v13 }
 0x24f   :  { %v821_v55 = vmul.f32 %v1882_v17, %v820_v63  ;;  %1280 = vmatpush.msra.mxu1 %v2744_v38 }
 0x250   :  { %1137 = vmatpush.msra.mxu0 %v2994_v20 }
 0x251   :  { %v823_v8 = vadd.f32 %v822_v60, %v821_v55  ;;  %1281 = vmatpush.msra.mxu1 %v2750_v41  ;;  %v3502_v41 = vld [vmem:[#allocation16_spill] sm:$0xff] }
 0x252   :  { %1138 = vmatpush.msra.mxu0 %v3010_v28  ;;  %v3505_v60 = vld [vmem:[#allocation12_spill] sm:$0xff] }
 0x253   :  { %v832_v12 = vsel %vm831_vm0, %v823_v8, 0.0  ;;  %v3091_v4 = vsel %vm831_vm0, %v823_v8, %v2763_v46  ;;  %v210_v46 = vadd.f32 %v3502_v41, %v2604_v61 }
 0x254   :  { %1825 = vst [vmem:[%s3481_s8 + $0x10] sm:$0xff] %v832_v12  ;;  %916 = vmatmul.f32.vlgmr.msrb.gmra.mxu3 %v3091_v4  ;;  %936 = vmatmul.f32.vlgmr.msrb.gmra.mxu0 %v3091_v4 }
 0x255   :  { %956 = vmatmul.f32.vlgmr.msrb.gmra.mxu1 %v3091_v4  ;;  %1306 = vmatpush.msrb.mxu3 %v2784_v43 }
 0x256   :  { %1449 = vmatpush.msrb.mxu0 %v2774_v39  ;;  %1469 = vmatpush.msrb.mxu1 %v2779_v9 }
 0x257   :  { %1307 = vmatpush.msrb.mxu3 %v2802_v56 }
 0x258   :  { %1450 = vmatpush.msrb.mxu0 %v2792_v6  ;;  %1470 = vmatpush.msrb.mxu1 %v2797_v52  ;;  %v894_v6 = vperm.slane %v892_v16, 0 }
 0x259   :  { %1308 = vmatpush.msrb.mxu3 %v2816_v5 }
 0x25a   :  { %1471 = vmatpush.msrb.mxu1 %v2811_v0 }
 0x25b   :  { %1309 = vmatpush.msrb.mxu3 %v2830_v15 }
 0x25c   :  { %1472 = vmatpush.msrb.mxu1 %v2825_v10 }
 0x25d   :  { %1310 = vmatpush.msrb.mxu3 %v2849_v2 }
 0x25e   :  { %1473 = vmatpush.msrb.mxu1 %v2844_v37  ;;  %v3503_v37 = vld [vmem:[#allocation6_spill] sm:$0xff] }
 0x25f   :  { %1311 = vmatpush.msrb.mxu3 %v2863_v19 }
 0x260   :  { %1474 = vmatpush.msrb.mxu1 %v2858_v14 }
 0x261   :  { %1312 = vmatpush.msrb.mxu3 %v2879_v7 }
 0x262   :  { %1475 = vmatpush.msrb.mxu1 %v2874_v29 }
 0x263   :  { %1313 = vmatpush.msrb.mxu3 %v2893_v58 }
 0x264   :  { %1476 = vmatpush.msrb.mxu1 %v2888_v57 }
 0x265   :  { %1314 = vmatpush.msrb.mxu3 %v2909_v18 }
 0x266   :  { %1477 = vmatpush.msrb.mxu1 %v2904_v11 }
 0x267   :  { %1315 = vmatpush.msrb.mxu3 %v2924_v45 }
 0x268   :  { %1478 = vmatpush.msrb.mxu1 %v2919_v42 }
 0x269   :  { %1316 = vmatpush.msrb.mxu3 %v2938_v1 }
 0x26a   :  { %1479 = vmatpush.msrb.mxu1 %v2933_v62 }
 0x26b   :  { %1317 = vmatpush.msrb.mxu3 %v2952_v22 }
 0x26c   :  { %1480 = vmatpush.msrb.mxu1 %v2947_v3  ;;  %v1933_v3 = vld [vmem:[%s3474_s1] sm:$0xff] }
 0x26d   :  { %1318 = vmatpush.msrb.mxu3 %v2966_v49  ;;  %vm1832_vm1 = vcmp.gt.s32.totalorder %v1933_v3, 4  ;;  %vm1836_vm2 = vcmp.gt.s32.totalorder %v1933_v3, 5 }
 0x26e   :  { %1481 = vmatpush.msrb.mxu1 %v2961_v26  ;;  %v3504_v26 = vmov 0  }
 0x26f   :  { %1319 = vmatpush.msrb.mxu3 %v2980_v13  ;;  %v1376_v53 = vsel %vm1836_vm2, 1, %v3504_v26 }
 0x270   :  { %1482 = vmatpush.msrb.mxu1 %v2975_v50  ;;  %v1193_v50 = vsel %vm1832_vm1, 1, %v3504_v26 }
 0x271   :  { %1320 = vmatpush.msrb.mxu3 %v2994_v20  ;;  %1195 = vperm.xlu2 %1852, %v1193_v50  }
 0x272   :  { %1483 = vmatpush.msrb.mxu1 %v2989_v31 }
 0x273   :  { %1321 = vmatpush.msrb.mxu3 %v3010_v28 }
 0x274   :  { %1484 = vmatpush.msrb.mxu1 %v3005_v44 }
 0x279   :  { %1378 = vperm.xlu2 %1852, %v1376_v53  }
 0x2d1   :  { %v937_v38 = vpop.f32.mrf.mxu0 }
 0x2d2   :  { %v938_v39 = vadd.f32 %v937_v38, %v895_v23  ;;  %v957_v47 = vpop.f32.mrf.mxu1 }
 0x2d3   :  { %v958_v40 = vadd.f32 %v957_v47, %v896_v35 }
 0x2d4   :  { %v980_v9 = vadd.f32 %v938_v39, %v210_v46 }
 0x2d6   :  { %v1827_v52 = vmul.f32 -1.442695, %v980_v9  ;;  %v1013_v9 = vpop.permute.xlu1 %1012 }
 0x2d7   :  { %v917_v0 = vpop.f32.mrf.mxu3  ;;  %vm1014_vm11 = vcmp.eq.s32.totalorder %v1013_v9, 1 }
 0x2d8   :  { %1883 = vpow2.f32 %v1827_v52  ;;  %v918_v10 = vadd.f32 %v917_v0, %v894_v6 }
 0x2da   :  { %v960_v31 = vadd.f32 %v918_v10, %v3503_v37 }
 0x2dc   :  { %v1826_v14 = vmul.f32 -1.442695, %v960_v31 }
 0x2de   :  { %v1884_v29 = vpop.eup %1883  ;;  %1885 = vpow2.f32 %v1826_v14 }
 0x2df   :  { %v984_v57 = vadd.f32 1.0, %v1884_v29 }
 0x2e1   :  { %1887 = vrcp.f32 %v984_v57  ;;  %v996_v17 = vand.u32 2147483648, %v984_v57  ;;  %vm990_vm8 = vweird.f32 %v984_v57  ;;  %v994_v55 = vand.u32 2147483647, %v984_v57 }
 0x2e3   :  { %v997_v16 = vor.u32 1.1754944e-38, %v996_v17  ;;  %vm995_vm10 = vcmp.eq.f32.partialorder %v994_v55, 8.507059e+37 }
 0x2e4   :  { %v1886_v11 = vpop.eup %1885 }
 0x2e5   :  { %v964_v42 = vadd.f32 1.0, %v1886_v11 }
 0x2e7   :  { %1889 = vrcp.f32 %v964_v42  ;;  %v1888_v62 = vpop.eup %1887  ;;  %v976_v36 = vand.u32 2147483648, %v964_v42  ;;  %v974_v54 = vand.u32 2147483647, %v964_v42  ;;  %vm970_vm4 = vweird.f32 %v964_v42 }
 0x2e8   :  { %v986_v44 = vmul.f32 %v1888_v62, %v984_v57  ;;  %vm991_vm7 = vweird.f32 %v1888_v62 }
 0x2e9   :  { %v977_v24 = vor.u32 1.1754944e-38, %v976_v36  ;;  %vm975_vm6 = vcmp.eq.f32.partialorder %v974_v54, 8.507059e+37  ;;  %vm992_vm9 = vmor %vm990_vm8, %vm991_vm7 }
 0x2ea   :  { %v987_v33 = vsub.f32 1.0, %v986_v44 }
 0x2ec   :  { %v988_v59 = vmul.f32 %v1888_v62, %v987_v33 }
 0x2ed   :  { %v1890_v34 = vpop.eup %1889 }
 0x2ee   :  { %v966_v27 = vmul.f32 %v1890_v34, %v964_v42  ;;  %vm971_vm3 = vweird.f32 %v1890_v34  ;;  %v989_v30 = vadd.f32 %v1888_v62, %v988_v59  ;;  %v3508_v59 = vld [vmem:[#allocation13_spill] sm:$0xff] }
 0x2ef   :  { %vm972_vm5 = vmor %vm970_vm4, %vm971_vm3 }
 0x2f0   :  { %v967_v21 = vsub.f32 1.0, %v966_v27  ;;  %v993_v12 = vsel %vm992_vm9, %v1888_v62, %v989_v30 }
 0x2f1   :  { %v998_v23 = vsel %vm995_vm10, %v997_v16, %v993_v12  ;;  %v3197_v12 = vld [vmem:[%s3479_s6 + $0x138] sm:$0xff]  ;;  %v3203_v16 = vld [vmem:[%s3479_s6 + $0x120] sm:$0xff] }
 0x2f2   :  { %v968_v25 = vmul.f32 %v1890_v34, %v967_v21  ;;  %v1003_v38 = vsub.f32 1.0, %v998_v23  ;;  %v1005_v46 = vmul.f32 %v998_v23, %v3091_v4  ;;  %1451 = vmatpush.msrb.mxu0 %v3197_v12  ;;  %v1258_v23 = vld [vmem:[%s3480_s7] sm:$0x7] }
 0x2f4   :  { %v969_v32 = vadd.f32 %v1890_v34, %v968_v25  ;;  %1452 = vmatpush.msrb.mxu0 %v3203_v16 }
 0x2f6   :  { %v973_v48 = vsel %vm972_vm5, %v1890_v34, %v969_v32 }
 0x2f7   :  { %v978_v63 = vsel %vm975_vm6, %v977_v24, %v973_v48 }
 0x2f8   :  { %v1000_v51 = vmul.f32 %v978_v63, %v958_v40  ;;  %v1196_v63 = vpop.permute.xlu2 %1195 }
 0x2f9   :  { %vm1197_vm4 = vcmp.eq.s32.totalorder %v1196_v63, 1 }
 0x2fa   :  { %v1001_v8 = vadd.f32 %v1000_v51, %v3505_v60 }
 0x2fc   :  { %1891 = vtanh.f32 %v1001_v8 }
 0x302   :  { %v1892_v41 = vpop.eup %1891 }
 0x303   :  { %v1004_v39 = vmul.f32 %v1892_v41, %v1003_v38  ;;  %v3212_v38 = vld [vmem:[%s3479_s6 + $0x108] sm:$0xff]  ;;  %v3218_v41 = vld [vmem:[%s3479_s6 + $0xf0] sm:$0xff] }
 0x304   :  { %1453 = vmatpush.msrb.mxu0 %v3212_v38 }
 0x305   :  { %v1006_v6 = vadd.f32 %v1005_v46, %v1004_v39  ;;  %v1260_v46 = vperm.slane %v1258_v23, 0  ;;  %v3224_v39 = vld [vmem:[%s3479_s6 + $0xd8] sm:$0xff] }
 0x306   :  { %1454 = vmatpush.msrb.mxu0 %v3218_v41 }
 0x307   :  { %v1015_v52 = vsel %vm1014_vm11, %v1006_v6, 0.0  ;;  %v3153_v0 = vsel %vm1014_vm11, %v1006_v6, %v3091_v4  ;;  %v3230_v6 = vld [vmem:[%s3479_s6 + $0xc0] sm:$0xff] }
 0x308   :  { %1829 = vst [vmem:[%s3481_s8 + $0x18] sm:$0xff] %v1015_v52  ;;  %1099 = vmatmul.f32.vlgmr.msrb.gmra.mxu2 %v3153_v0  ;;  %1119 = vmatmul.f32.vlgmr.msra.gmra.mxu3 %v3153_v0 }
 0x309   :  { %1139 = vmatmul.f32.vlgmr.msra.gmra.mxu0 %v3153_v0  ;;  %1489 = vmatpush.msrb.mxu2 %v2784_v43  ;;  %v1075_v43 = vld [vmem:[%s3480_s7] sm:$0x7] }
 0x30a   :  { %v1079_v62 = vperm.slane %v1075_v43, 2  ;;  %1455 = vmatpush.msrb.mxu0 %v3224_v39 }
 0x30b   :  { %1490 = vmatpush.msrb.mxu2 %v2802_v56  ;;  %v1077_v56 = vperm.slane %v1075_v43, 0 }
 0x30c   :  { %1456 = vmatpush.msrb.mxu0 %v3230_v6 }
 0x30d   :  { %1491 = vmatpush.msrb.mxu2 %v2816_v5  ;;  %v1078_v5 = vperm.slane %v1075_v43, 1  ;;  %v3509_v43 = vld [vmem:[#allocation8_spill] sm:$0xff] }
 0x30f   :  { %1492 = vmatpush.msrb.mxu2 %v2830_v15 }
 0x311   :  { %1493 = vmatpush.msrb.mxu2 %v2849_v2 }
 0x313   :  { %1494 = vmatpush.msrb.mxu2 %v2863_v19  ;;  %v3506_v19 = vld [vmem:[#allocation17_spill] sm:$0xff] }
 0x315   :  { %1495 = vmatpush.msrb.mxu2 %v2879_v7  ;;  %v213_v7 = vadd.f32 %v3506_v19, %v2604_v61 }
 0x317   :  { %1496 = vmatpush.msrb.mxu2 %v2893_v58 }
 0x319   :  { %1497 = vmatpush.msrb.mxu2 %v2909_v18 }
 0x31b   :  { %1498 = vmatpush.msrb.mxu2 %v2924_v45  ;;  %v3507_v45 = vld [vmem:[#allocation7_spill] sm:$0xff] }
 0x31d   :  { %1499 = vmatpush.msrb.mxu2 %v2938_v1 }
 0x31f   :  { %1500 = vmatpush.msrb.mxu2 %v2952_v22 }
 0x321   :  { %1501 = vmatpush.msrb.mxu2 %v2966_v49 }
 0x323   :  { %1502 = vmatpush.msrb.mxu2 %v2980_v13 }
 0x325   :  { %1503 = vmatpush.msrb.mxu2 %v2994_v20 }
 0x327   :  { %1504 = vmatpush.msrb.mxu2 %v3010_v28 }
 0x386   :  { %v1140_v50 = vpop.f32.mrf.mxu0 }
 0x387   :  { %v1141_v33 = vadd.f32 %v1140_v50, %v1079_v62  ;;  %v1262_v62 = vperm.slane %v1258_v23, 2 }
 0x38b   :  { %v1100_v15 = vpop.f32.mrf.mxu2  ;;  %v1120_v2 = vpop.f32.mrf.mxu3 }
 0x38c   :  { %v1101_v58 = vadd.f32 %v1100_v15, %v1077_v56  ;;  %v1121_v18 = vadd.f32 %v1120_v2, %v1078_v5  ;;  %v1261_v5 = vperm.slane %v1258_v23, 1  ;;  %v3243_v15 = vld [vmem:[%s3479_s6 + $0x90] sm:$0xff] }
 0x38e   :  { %v1143_v1 = vadd.f32 %v1101_v58, %v3507_v45  ;;  %v1163_v13 = vadd.f32 %v1121_v18, %v213_v7  ;;  %v3249_v7 = vld [vmem:[%s3479_s6 + $0x78] sm:$0xff]  ;;  %v3510_v58 = vld [vmem:[#allocation18_spill] sm:$0xff] }
 0x38f   :  { %v216_v18 = vadd.f32 %v3510_v58, %v2604_v61  ;;  %v1616_v58 = vld [vmem:[%s3479_s6 + $0x140] sm:$0xff] }
 0x390   :  { %v1830_v22 = vmul.f32 -1.442695, %v1143_v1  ;;  %v1831_v20 = vmul.f32 -1.442695, %v1163_v13  ;;  %v3257_v1 = vld [vmem:[%s3479_s6 + $0x60] sm:$0xff] }
 0x392   :  { %1893 = vpow2.f32 %v1830_v22  ;;  %v3263_v22 = vld [vmem:[%s3479_s6 + $0x48] sm:$0xff] }
 0x393   :  { %1895 = vpow2.f32 %v1831_v20 }
 0x398   :  { %v1894_v28 = vpop.eup %1893 }
 0x399   :  { %v1896_v49 = vpop.eup %1895  ;;  %v1147_v4 = vadd.f32 1.0, %v1894_v28  ;;  %v3269_v28 = vld [vmem:[%s3479_s6 + $0x30] sm:$0xff] }
 0x39a   :  { %v1167_v10 = vadd.f32 1.0, %v1896_v49 }
 0x39b   :  { %1897 = vrcp.f32 %v1147_v4  ;;  %v1159_v11 = vand.u32 2147483648, %v1147_v4  ;;  %v1157_v26 = vand.u32 2147483647, %v1147_v4  ;;  %vm1153_vm13 = vweird.f32 %v1147_v4 }
 0x39c   :  { %1899 = vrcp.f32 %v1167_v10  ;;  %v1179_v35 = vand.u32 2147483648, %v1167_v10  ;;  %vm1173_vm1 = vweird.f32 %v1167_v10  ;;  %v1177_v54 = vand.u32 2147483647, %v1167_v10 }
 0x39d   :  { %v1160_v27 = vor.u32 1.1754944e-38, %v1159_v11  ;;  %vm1158_vm15 = vcmp.eq.f32.partialorder %v1157_v26, 8.507059e+37 }
 0x39e   :  { %v1180_v24 = vor.u32 1.1754944e-38, %v1179_v35  ;;  %vm1178_vm3 = vcmp.eq.f32.partialorder %v1177_v54, 8.507059e+37 }
 0x3a1   :  { %v1898_v37 = vpop.eup %1897 }
 0x3a2   :  { %v1900_v31 = vpop.eup %1899  ;;  %v1149_v14 = vmul.f32 %v1898_v37, %v1147_v4  ;;  %vm1154_vm12 = vweird.f32 %v1898_v37 }
 0x3a3   :  { %v1169_v29 = vmul.f32 %v1900_v31, %v1167_v10  ;;  %vm1155_vm14 = vmor %vm1153_vm13, %vm1154_vm12  ;;  %vm1174_vm0 = vweird.f32 %v1900_v31  ;;  %v3275_v10 = vld [vmem:[%s3479_s6 + $0x18] sm:$0xff] }
 0x3a4   :  { %v1150_v57 = vsub.f32 1.0, %v1149_v14  ;;  %vm1175_vm2 = vmor %vm1173_vm1, %vm1174_vm0 }
 0x3a5   :  { %v1170_v42 = vsub.f32 1.0, %v1169_v29 }
 0x3a6   :  { %v1151_v3 = vmul.f32 %v1898_v37, %v1150_v57 }
 0x3a7   :  { %v1171_v44 = vmul.f32 %v1900_v31, %v1170_v42 }
 0x3a8   :  { %v1152_v34 = vadd.f32 %v1898_v37, %v1151_v3 }
 0x3a9   :  { %v1172_v36 = vadd.f32 %v1900_v31, %v1171_v44 }
 0x3aa   :  { %v1156_v21 = vsel %vm1155_vm14, %v1898_v37, %v1152_v34  ;;  %v3281_v37 = vld [vmem:[%s3479_s6] sm:$0xff] }
 0x3ab   :  { %v1161_v53 = vsel %vm1158_vm15, %v1160_v27, %v1156_v21  ;;  %v1176_v32 = vsel %vm1175_vm2, %v1900_v31, %v1172_v36 }
 0x3ac   :  { %v1183_v25 = vmul.f32 %v1161_v53, %v1141_v33  ;;  %v1181_v40 = vsel %vm1178_vm3, %v1180_v24, %v1176_v32  ;;  %v3511_v24 = vld [vmem:[#allocation14_spill] sm:$0xff] }
 0x3ad   :  { %v1186_v48 = vsub.f32 1.0, %v1181_v40  ;;  %v1188_v51 = vmul.f32 %v1181_v40, %v3153_v0 }
 0x3ae   :  { %v1184_v47 = vadd.f32 %v1183_v25, %v3508_v59 }
 0x3b0   :  { %1901 = vtanh.f32 %v1184_v47 }
 0x3b6   :  { %v1902_v30 = vpop.eup %1901 }
 0x3b7   :  { %v1187_v17 = vmul.f32 %v1902_v30, %v1186_v48 }
 0x3b9   :  { %v1189_v55 = vadd.f32 %v1188_v51, %v1187_v17 }
 0x3bb   :  { %v1198_v60 = vsel %vm1197_vm4, %v1189_v55, 0.0  ;;  %v3186_v8 = vsel %vm1197_vm4, %v1189_v55, %v3153_v0  ;;  %v3236_v0 = vld [vmem:[%s3479_s6 + $0xa8] sm:$0xff]  ;;  %v1379_v55 = vpop.permute.xlu2 %1378 }
 0x3bc   :  { %1833 = vst [vmem:[%s3481_s8 + $0x20] sm:$0xff] %v1198_v60  ;;  %1282 = vmatmul.f32.vlgmr.msra.gmra.mxu1 %v3186_v8  ;;  %1302 = vmatmul.f32.vlgmr.msra.gmra.mxu2 %v3186_v8  ;;  %vm1380_vm13 = vcmp.eq.s32.totalorder %v1379_v55, 1 }
 0x3bd   :  { %1322 = vmatmul.f32.vlgmr.msrb.gmra.mxu3 %v3186_v8  ;;  %1457 = vmatpush.msrb.mxu0 %v3236_v0 }
 0x3bf   :  { %1458 = vmatpush.msrb.mxu0 %v3243_v15 }
 0x3c1   :  { %1459 = vmatpush.msrb.mxu0 %v3249_v7 }
 0x3c3   :  { %1460 = vmatpush.msrb.mxu0 %v3257_v1 }
 0x3c5   :  { %1461 = vmatpush.msrb.mxu0 %v3263_v22 }
 0x3c7   :  { %1462 = vmatpush.msrb.mxu0 %v3269_v28 }
 0x3c9   :  { %1463 = vmatpush.msrb.mxu0 %v3275_v10 }
 0x3cb   :  { %1464 = vmatpush.msrb.mxu0 %v3281_v37 }
 0x439   :  { %v1283_v9 = vpop.f32.mrf.mxu1 }
 0x43a   :  { %v1284_v52 = vadd.f32 %v1283_v9, %v1260_v46 }
 0x43c   :  { %v1326_v56 = vadd.f32 %v1284_v52, %v3509_v43  ;;  %v1621_v43 = vld [vmem:[%s3479_s6 + $0x168] sm:$0xff] }
 0x43d   :  { %1632 = vmatpush.msra.mxu3 %v1621_v43 }
 0x43e   :  { %v1834_v2 = vmul.f32 -1.442695, %v1326_v56  ;;  %v1622_v56 = vld [vmem:[%s3479_s6 + $0x170] sm:$0xff] }
 0x43f   :  { %v1303_v19 = vpop.f32.mrf.mxu2  ;;  %1652 = vmatpush.msra.mxu0 %v1622_v56 }
 0x440   :  { %1903 = vpow2.f32 %v1834_v2  ;;  %v1304_v45 = vadd.f32 %v1303_v19, %v1261_v5  ;;  %v1323_v44 = vpop.f32.mrf.mxu3  ;;  %v1618_v5 = vld [vmem:[%s3479_s6 + $0x150] sm:$0xff]  ;;  %v1619_v2 = vld [vmem:[%s3479_s6 + $0x158] sm:$0xff]  ;;  %v1620_v19 = vld [vmem:[%s3479_s6 + $0x160] sm:$0xff] }
 0x441   :  { %v1324_v53 = vadd.f32 %v1323_v44, %v1262_v62  ;;  %1633 = vmatpush.msra.mxu3 %v1618_v5  ;;  %1653 = vmatpush.msra.mxu0 %v1619_v2  ;;  %v3512_v62 = vld [vmem:[#allocation19_spill] sm:$0xff]  ;;  %v1599_v44 = vld [vmem:[%s3479_s6 + $0xb8] sm:$0xff] }
 0x442   :  { %v1346_v13 = vadd.f32 %v1304_v45, %v216_v18  ;;  %v1617_v18 = vld [vmem:[%s3479_s6 + $0x148] sm:$0xff] }
 0x443   :  { %1634 = vmatpush.msra.mxu3 %v3197_v12  ;;  %1654 = vmatpush.msra.mxu0 %v1616_v58  ;;  %v1613_v45 = vld [vmem:[%s3479_s6 + $0x128] sm:$0xff]  ;;  %v1610_v12 = vld [vmem:[%s3479_s6 + $0x110] sm:$0xff] }
 0x444   :  { %v1835_v20 = vmul.f32 -1.442695, %v1346_v13  ;;  %v1614_v13 = vld [vmem:[%s3479_s6 + $0x130] sm:$0xff] }
 0x445   :  { %1635 = vmatpush.msra.mxu3 %v3203_v16  ;;  %1655 = vmatpush.msra.mxu0 %v1613_v45  ;;  %v1607_v16 = vld [vmem:[%s3479_s6 + $0xf8] sm:$0xff] }
 0x446   :  { %v1904_v49 = vpop.eup %1903  ;;  %1905 = vpow2.f32 %v1835_v20  ;;  %v3330_v20 = vld [vmem:[%s3480_s7] sm:$0x7] }
 0x447   :  { %v1330_v4 = vadd.f32 1.0, %v1904_v49  ;;  %v1611_v49 = vld [vmem:[%s3479_s6 + $0x118] sm:$0xff]  ;;  %1636 = vmatpush.msra.mxu3 %v3212_v38  ;;  %1656 = vmatpush.msra.mxu0 %v1610_v12  ;;  %v1604_v38 = vld [vmem:[%s3479_s6 + $0xe0] sm:$0xff] }
 0x449   :  { %1907 = vrcp.f32 %v1330_v4  ;;  %v1342_v42 = vand.u32 2147483648, %v1330_v4  ;;  %v1340_v26 = vand.u32 2147483647, %v1330_v4  ;;  %vm1336_vm6 = vweird.f32 %v1330_v4  ;;  %1637 = vmatpush.msra.mxu3 %v3218_v41  ;;  %1657 = vmatpush.msra.mxu0 %v1607_v16  ;;  %v1601_v41 = vld [vmem:[%s3479_s6 + $0xc8] sm:$0xff] }
 0x44b   :  { %v1343_v33 = vor.u32 1.1754944e-38, %v1342_v42  ;;  %vm1341_vm8 = vcmp.eq.f32.partialorder %v1340_v26, 8.507059e+37  ;;  %1638 = vmatpush.msra.mxu3 %v3224_v39  ;;  %1658 = vmatpush.msra.mxu0 %v1604_v38  ;;  %v1602_v42 = vld [vmem:[%s3479_s6 + $0xd0] sm:$0xff] }
 0x44c   :  { %v1906_v31 = vpop.eup %1905  ;;  %v1598_v39 = vld [vmem:[%s3479_s6 + $0xb0] sm:$0xff] }
 0x44d   :  { %v1350_v14 = vadd.f32 1.0, %v1906_v31  ;;  %v1443_v31 = vperm.slane %v3330_v20, 0  ;;  %1639 = vmatpush.msra.mxu3 %v3230_v6  ;;  %1659 = vmatpush.msra.mxu0 %v1601_v41  ;;  %v1595_v6 = vld [vmem:[%s3479_s6 + $0x98] sm:$0xff] }
 0x44f   :  { %v1908_v29 = vpop.eup %1907  ;;  %1909 = vrcp.f32 %v1350_v14  ;;  %v1362_v54 = vand.u32 2147483648, %v1350_v14  ;;  %v1360_v47 = vand.u32 2147483647, %v1350_v14  ;;  %vm1356_vm10 = vweird.f32 %v1350_v14  ;;  %1640 = vmatpush.msra.mxu3 %v3236_v0  ;;  %1660 = vmatpush.msra.mxu0 %v1598_v39  ;;  %v1592_v0 = vld [vmem:[%s3479_s6 + $0x80] sm:$0xff]  ;;  %v3515_v39 = vld [vmem:[#allocation20_spill] sm:$0xff] }
 0x450   :  { %v1332_v57 = vmul.f32 %v1908_v29, %v1330_v4  ;;  %vm1337_vm5 = vweird.f32 %v1908_v29  ;;  %v1608_v4 = vld [vmem:[%s3479_s6 + $0x100] sm:$0xff] }
 0x451   :  { %vm1338_vm7 = vmor %vm1336_vm6, %vm1337_vm5  ;;  %v1363_v48 = vor.u32 1.1754944e-38, %v1362_v54  ;;  %vm1361_vm12 = vcmp.eq.f32.partialorder %v1360_v47, 8.507059e+37  ;;  %1641 = vmatpush.msra.mxu3 %v3243_v15  ;;  %1661 = vmatpush.msra.mxu0 %v1595_v6  ;;  %v1589_v15 = vld [vmem:[%s3479_s6 + $0x68] sm:$0xff]  ;;  %v1586_v54 = vld [vmem:[%s3479_s6 + $0x50] sm:$0xff] }
 0x452   :  { %v1333_v11 = vsub.f32 1.0, %v1332_v57 }
 0x453   :  { %1642 = vmatpush.msra.mxu3 %v3249_v7  ;;  %1662 = vmatpush.msra.mxu0 %v1592_v0  ;;  %v1587_v7 = vld [vmem:[%s3479_s6 + $0x58] sm:$0xff] }
 0x454   :  { %v1334_v3 = vmul.f32 %v1908_v29, %v1333_v11 }
 0x455   :  { %v1910_v50 = vpop.eup %1909  ;;  %1643 = vmatpush.msra.mxu3 %v3257_v1  ;;  %1663 = vmatpush.msra.mxu0 %v1589_v15  ;;  %v1584_v1 = vld [vmem:[%s3479_s6 + $0x40] sm:$0xff] }
 0x456   :  { %v1352_v34 = vmul.f32 %v1910_v50, %v1350_v14  ;;  %v1335_v27 = vadd.f32 %v1908_v29, %v1334_v3  ;;  %vm1357_vm9 = vweird.f32 %v1910_v50  ;;  %v1444_v14 = vperm.slane %v3330_v20, 1 }
 0x457   :  { %vm1358_vm11 = vmor %vm1356_vm10, %vm1357_vm9  ;;  %v219_v3 = vadd.f32 %v3512_v62, %v2604_v61  ;;  %1644 = vmatpush.msra.mxu3 %v3263_v22  ;;  %1664 = vmatpush.msra.mxu0 %v1586_v54  ;;  %v1580_v22 = vld [vmem:[%s3479_s6 + $0x20] sm:$0xff] }
 0x458   :  { %v1353_v21 = vsub.f32 1.0, %v1352_v34  ;;  %v1339_v36 = vsel %vm1338_vm7, %v1908_v29, %v1335_v27  ;;  %v1605_v29 = vld [vmem:[%s3479_s6 + $0xe8] sm:$0xff]  ;;  %v3513_v34 = vld [vmem:[#allocation9_spill] sm:$0xff] }
 0x459   :  { %v1344_v35 = vsel %vm1341_vm8, %v1343_v33, %v1339_v36  ;;  %1645 = vmatpush.msra.mxu3 %v3269_v28  ;;  %v1577_v28 = vld [vmem:[%s3479_s6 + $0x8] sm:$0xff] }
 0x45a   :  { %v1354_v25 = vmul.f32 %v1910_v50, %v1353_v21  ;;  %v1366_v59 = vmul.f32 %v1344_v35, %v1324_v53  ;;  %v1596_v21 = vld [vmem:[%s3479_s6 + $0xa0] sm:$0xff]  ;;  %v1593_v35 = vld [vmem:[%s3479_s6 + $0x88] sm:$0xff] }
 0x45b   :  { %1646 = vmatpush.msra.mxu3 %v3275_v10 }
 0x45c   :  { %v1355_v32 = vadd.f32 %v1910_v50, %v1354_v25  ;;  %v1367_v40 = vadd.f32 %v1366_v59, %v3511_v24  ;;  %v1590_v25 = vld [vmem:[%s3479_s6 + $0x70] sm:$0xff]  ;;  %v1583_v59 = vld [vmem:[%s3479_s6 + $0x38] sm:$0xff] }
 0x45d   :  { %1665 = vmatpush.msra.mxu0 %v1583_v59  ;;  %1647 = vmatpush.msra.mxu3 %v3281_v37 }
 0x45e   :  { %v1359_v30 = vsel %vm1358_vm11, %v1910_v50, %v1355_v32  ;;  %1911 = vtanh.f32 %v1367_v40  ;;  %v1581_v40 = vld [vmem:[%s3479_s6 + $0x28] sm:$0xff] }
 0x45f   :  { %v1364_v63 = vsel %vm1361_vm12, %v1363_v48, %v1359_v30  ;;  %1666 = vmatpush.msra.mxu0 %v1580_v22  ;;  %v1578_v30 = vld [vmem:[%s3479_s6 + $0x10] sm:$0xff] }
 0x460   :  { %v1369_v17 = vsub.f32 1.0, %v1364_v63  ;;  %v1371_v23 = vmul.f32 %v1364_v63, %v3186_v8 }
 0x461   :  { %1667 = vmatpush.msra.mxu0 %v1577_v28 }
 0x464   :  { %v1912_v51 = vpop.eup %1911 }
 0x465   :  { %v1370_v60 = vmul.f32 %v1912_v51, %v1369_v17 }
 0x467   :  { %v1372_v46 = vadd.f32 %v1371_v23, %v1370_v60 }
 0x469   :  { %v1381_v9 = vsel %vm1380_vm13, %v1372_v46, 0.0  ;;  %v3287_v52 = vsel %vm1380_vm13, %v1372_v46, %v3186_v8  ;;  %v1623_v8 = vld [vmem:[%s3479_s6 + $0x178] sm:$0xff]  ;;  %v1445_v46 = vperm.slane %v3330_v20, 2  ;;  %v3514_v20 = vld [vmem:[#allocation15_spill] sm:$0xff] }
 0x46a   :  { %1837 = vst [vmem:[%s3481_s8 + $0x28] sm:$0xff] %v1381_v9  ;;  %1465 = vmatmul.f32.vlgmr.msrb.gmra.mxu0 %v3287_v52  ;;  %1485 = vmatmul.f32.vlgmr.msrb.gmra.mxu1 %v3287_v52 }
 0x46b   :  { %1505 = vmatmul.f32.vlgmr.msrb.gmra.mxu2 %v3287_v52  ;;  %1672 = vmatpush.msra.mxu1 %v1623_v8 }
 0x46d   :  { %1673 = vmatpush.msra.mxu1 %v1620_v19 }
 0x46f   :  { %1674 = vmatpush.msra.mxu1 %v1617_v18 }
 0x471   :  { %1675 = vmatpush.msra.mxu1 %v1614_v13 }
 0x473   :  { %1676 = vmatpush.msra.mxu1 %v1611_v49 }
 0x475   :  { %1677 = vmatpush.msra.mxu1 %v1608_v4 }
 0x477   :  { %1678 = vmatpush.msra.mxu1 %v1605_v29  ;;  %v1562_v29 = vpop.permute.xlu0 %1561 }
 0x478   :  { %vm1563_vm6 = vcmp.eq.s32.totalorder %v1562_v29, 1 }
 0x479   :  { %1679 = vmatpush.msra.mxu1 %v1602_v42 }
 0x47b   :  { %1680 = vmatpush.msra.mxu1 %v1599_v44 }
 0x47d   :  { %1681 = vmatpush.msra.mxu1 %v1596_v21 }
 0x47f   :  { %1682 = vmatpush.msra.mxu1 %v1593_v35 }
 0x481   :  { %1683 = vmatpush.msra.mxu1 %v1590_v25 }
 0x483   :  { %1684 = vmatpush.msra.mxu1 %v1587_v7 }
 0x485   :  { %1685 = vmatpush.msra.mxu1 %v1584_v1 }
 0x487   :  { %1686 = vmatpush.msra.mxu1 %v1581_v40 }
 0x489   :  { %1687 = vmatpush.msra.mxu1 %v1578_v30 }
 0x4e7   :  { %v1466_v57 = vpop.f32.mrf.mxu0  ;;  %v1486_v11 = vpop.f32.mrf.mxu1 }
 0x4e8   :  { %v1467_v26 = vadd.f32 %v1466_v57, %v1443_v31  ;;  %v1487_v50 = vadd.f32 %v1486_v11, %v1444_v14 }
 0x4ea   :  { %v1509_v27 = vadd.f32 %v1467_v26, %v3513_v34  ;;  %v1529_v33 = vadd.f32 %v1487_v50, %v219_v3  ;;  %v1624_v3 = vld [vmem:[%s3480_s7] sm:$0x7] }
 0x4eb   :  { %v1627_v26 = vperm.slane %v1624_v3, 1  ;;  %v1628_v22 = vperm.slane %v1624_v3, 2 }
 0x4ec   :  { %v1838_v53 = vmul.f32 -1.442695, %v1509_v27  ;;  %v1839_v36 = vmul.f32 -1.442695, %v1529_v33  ;;  %v1626_v27 = vperm.slane %v1624_v3, 0 }
 0x4ee   :  { %1913 = vpow2.f32 %v1838_v53  ;;  %v1506_v8 = vpop.f32.mrf.mxu2  ;;  %v3516_v53 = vld [vmem:[#allocation11_spill] sm:$0xff] }
 0x4ef   :  { %1915 = vpow2.f32 %v1839_v36  ;;  %v1507_v2 = vadd.f32 %v1506_v8, %v1445_v46  ;;  %v3518_v46 = vld [vmem:[#allocation21_spill] sm:$0xff] }
 0x4f4   :  { %v1914_v47 = vpop.eup %1913 }
 0x4f5   :  { %v1916_v32 = vpop.eup %1915  ;;  %v1513_v24 = vadd.f32 1.0, %v1914_v47 }
 0x4f6   :  { %v1533_v48 = vadd.f32 1.0, %v1916_v32 }
 0x4f7   :  { %1917 = vrcp.f32 %v1513_v24  ;;  %v1525_v23 = vand.u32 2147483648, %v1513_v24  ;;  %v1523_v43 = vand.u32 2147483647, %v1513_v24  ;;  %vm1519_vm15 = vweird.f32 %v1513_v24 }
 0x4f8   :  { %1919 = vrcp.f32 %v1533_v48  ;;  %v1545_v45 = vand.u32 2147483648, %v1533_v48  ;;  %vm1539_vm3 = vweird.f32 %v1533_v48  ;;  %v1543_v12 = vand.u32 2147483647, %v1533_v48 }
 0x4f9   :  { %v1526_v37 = vor.u32 1.1754944e-38, %v1525_v23  ;;  %vm1524_vm1 = vcmp.eq.f32.partialorder %v1523_v43, 8.507059e+37  ;;  %v3517_v23 = vld [vmem:[#allocation10_spill] sm:$0xff] }
 0x4fa   :  { %v1546_v4 = vor.u32 1.1754944e-38, %v1545_v45  ;;  %vm1544_vm5 = vcmp.eq.f32.partialorder %v1543_v12, 8.507059e+37  ;;  %v1745_v45 = vpop.permute.xlu1 %1744 }
 0x4fd   :  { %v1918_v63 = vpop.eup %1917 }
 0x4fe   :  { %v1920_v17 = vpop.eup %1919  ;;  %v1515_v51 = vmul.f32 %v1918_v63, %v1513_v24  ;;  %vm1520_vm14 = vweird.f32 %v1918_v63 }
 0x4ff   :  { %v1535_v10 = vmul.f32 %v1920_v17, %v1533_v48  ;;  %vm1521_vm0 = vmor %vm1519_vm15, %vm1520_vm14  ;;  %vm1540_vm2 = vweird.f32 %v1920_v17  ;;  %vm1746_vm15 = vcmp.eq.s32.totalorder %v1745_v45, 1 }
 0x500   :  { %v1516_v55 = vsub.f32 1.0, %v1515_v51  ;;  %vm1541_vm4 = vmor %vm1539_vm3, %vm1540_vm2 }
 0x501   :  { %v1536_v60 = vsub.f32 1.0, %v1535_v10 }
 0x502   :  { %v1517_v9 = vmul.f32 %v1918_v63, %v1516_v55 }
 0x503   :  { %v1537_v56 = vmul.f32 %v1920_v17, %v1536_v60 }
 0x504   :  { %v1518_v5 = vadd.f32 %v1918_v63, %v1517_v9  ;;  %v263_v9 = vadd.f32 %v3518_v46, %v3517_v23 }
 0x505   :  { %v1538_v18 = vadd.f32 %v1920_v17, %v1537_v56 }
 0x506   :  { %v1522_v19 = vsel %vm1521_vm0, %v1918_v63, %v1518_v5 }
 0x507   :  { %v1527_v58 = vsel %vm1524_vm1, %v1526_v37, %v1522_v19  ;;  %v1542_v16 = vsel %vm1541_vm4, %v1920_v17, %v1538_v18 }
 0x508   :  { %v1549_v13 = vmul.f32 %v1527_v58, %v1507_v2  ;;  %v1547_v31 = vsel %vm1544_vm5, %v1546_v4, %v1542_v16 }
 0x509   :  { %v1552_v14 = vsub.f32 1.0, %v1547_v31  ;;  %v1554_v11 = vmul.f32 %v1547_v31, %v3287_v52 }
 0x50a   :  { %v1550_v49 = vadd.f32 %v1549_v13, %v3514_v20 }
 0x50c   :  { %1921 = vtanh.f32 %v1550_v49 }
 0x512   :  { %v1922_v38 = vpop.eup %1921 }
 0x513   :  { %v1553_v57 = vmul.f32 %v1922_v38, %v1552_v14 }
 0x515   :  { %v1555_v41 = vadd.f32 %v1554_v11, %v1553_v57 }
 0x517   :  { %v1564_v42 = vsel %vm1563_vm6, %v1555_v41, 0.0  ;;  %v3425_v62 = vsel %vm1563_vm6, %v1555_v41, %v3287_v52  ;;  %v222_v52 = vadd.f32 %v3515_v39, %v2604_v61 }
 0x518   :  { %1841 = vst [vmem:[%s3481_s8 + $0x30] sm:$0xff] %v1564_v42  ;;  %1648 = vmatmul.f32.vlgmr.msra.gmra.mxu3 %v3425_v62  ;;  %1668 = vmatmul.f32.vlgmr.msra.gmra.mxu0 %v3425_v62 }
 0x519   :  { %1688 = vmatmul.f32.vlgmr.msra.gmra.mxu1 %v3425_v62 }
 0x595   :  { %v1669_v50 = vpop.f32.mrf.mxu0 }
 0x596   :  { %v1670_v44 = vadd.f32 %v1669_v50, %v1627_v26  ;;  %v1689_v30 = vpop.f32.mrf.mxu1 }
 0x597   :  { %v1690_v51 = vadd.f32 %v1689_v30, %v1628_v22 }
 0x598   :  { %v1712_v34 = vadd.f32 %v1670_v44, %v222_v52 }
 0x59a   :  { %v1843_v33 = vmul.f32 -1.442695, %v1712_v34 }
 0x59b   :  { %v1649_v6 = vpop.f32.mrf.mxu3 }
 0x59c   :  { %1923 = vpow2.f32 %v1843_v33  ;;  %v1650_v21 = vadd.f32 %v1649_v6, %v1626_v27 }
 0x59e   :  { %v1692_v36 = vadd.f32 %v1650_v21, %v3516_v53 }
 0x5a0   :  { %v1842_v0 = vmul.f32 -1.442695, %v1692_v36 }
 0x5a2   :  { %v1924_v35 = vpop.eup %1923  ;;  %1925 = vpow2.f32 %v1842_v0 }
 0x5a3   :  { %v1716_v15 = vadd.f32 1.0, %v1924_v35 }
 0x5a5   :  { %1927 = vrcp.f32 %v1716_v15  ;;  %v1728_v43 = vand.u32 2147483648, %v1716_v15  ;;  %vm1722_vm12 = vweird.f32 %v1716_v15  ;;  %v1726_v8 = vand.u32 2147483647, %v1716_v15 }
 0x5a7   :  { %v1729_v2 = vor.u32 1.1754944e-38, %v1728_v43  ;;  %vm1727_vm14 = vcmp.eq.f32.partialorder %v1726_v8, 8.507059e+37 }
 0x5a8   :  { %v1926_v25 = vpop.eup %1925 }
 0x5a9   :  { %v1696_v54 = vadd.f32 1.0, %v1926_v25 }
 0x5ab   :  { %1929 = vrcp.f32 %v1696_v54  ;;  %v1928_v7 = vpop.eup %1927  ;;  %v1708_v24 = vand.u32 2147483648, %v1696_v54  ;;  %v1706_v48 = vand.u32 2147483647, %v1696_v54  ;;  %vm1702_vm8 = vweird.f32 %v1696_v54 }
 0x5ac   :  { %v1718_v59 = vmul.f32 %v1928_v7, %v1716_v15  ;;  %vm1723_vm11 = vweird.f32 %v1928_v7 }
 0x5ad   :  { %v1709_v17 = vor.u32 1.1754944e-38, %v1708_v24  ;;  %vm1707_vm10 = vcmp.eq.f32.partialorder %v1706_v48, 8.507059e+37  ;;  %vm1724_vm13 = vmor %vm1722_vm12, %vm1723_vm11 }
 0x5ae   :  { %v1719_v47 = vsub.f32 1.0, %v1718_v59 }
 0x5b0   :  { %v1720_v28 = vmul.f32 %v1928_v7, %v1719_v47 }
 0x5b1   :  { %v1930_v61 = vpop.eup %1929 }
 0x5b2   :  { %v1698_v1 = vmul.f32 %v1930_v61, %v1696_v54  ;;  %vm1703_vm7 = vweird.f32 %v1930_v61  ;;  %v1721_v55 = vadd.f32 %v1928_v7, %v1720_v28 }
 0x5b3   :  { %vm1704_vm9 = vmor %vm1702_vm8, %vm1703_vm7 }
 0x5b4   :  { %v1699_v32 = vsub.f32 1.0, %v1698_v1  ;;  %v1725_v37 = vsel %vm1724_vm13, %v1928_v7, %v1721_v55 }
 0x5b5   :  { %v1730_v19 = vsel %vm1727_vm14, %v1729_v2, %v1725_v37 }
 0x5b6   :  { %v1700_v40 = vmul.f32 %v1930_v61, %v1699_v32  ;;  %v1735_v58 = vsub.f32 1.0, %v1730_v19  ;;  %v1737_v13 = vmul.f32 %v1730_v19, %v3425_v62 }
 0x5b8   :  { %v1701_v63 = vadd.f32 %v1930_v61, %v1700_v40 }
 0x5ba   :  { %v1705_v10 = vsel %vm1704_vm9, %v1930_v61, %v1701_v63 }
 0x5bb   :  { %v1710_v60 = vsel %vm1707_vm10, %v1709_v17, %v1705_v10 }
 0x5bc   :  { %v1732_v56 = vmul.f32 %v1710_v60, %v1690_v51 }
 0x5be   :  { %v1733_v5 = vadd.f32 %v1732_v56, %v263_v9 }
 0x5c0   :  { %1931 = vtanh.f32 %v1733_v5 }
 0x5c6   :  { %v1932_v18 = vpop.eup %1931 }
 0x5c7   :  { %v1736_v12 = vmul.f32 %v1932_v18, %v1735_v58 }
 0x5c9   :  { %v1738_v20 = vadd.f32 %v1737_v13, %v1736_v12 }
 0x5cb   :  { %v1747_v49 = vsel %vm1746_vm15, %v1738_v20, 0.0  ;;  %v1750_v16 = vsel %vm1746_vm15, %v1738_v20, %v3425_v62 }
 0x5cc   :  { %1845 = vst [vmem:[%s3481_s8 + $0x38] sm:$0xff] %v1747_v49 }
 0x5cd   :  { %1751 = vst [vmem:[#allocation2] sm:$0xff] %v1750_v16 }
 0x5ce PF:  { %s1752_s26 = sld [smem:[#allocation5]] }
 0x5d4   :  { %p1847_p1 = scmp.gt.s32.totalorder %s1752_s26, 0 }
 0x5d6   :  { %1756 = sbr.rel (%p1847_p1) target bundleno = 1508 (0x5e4), region = 41 }
 0x5db   :  { %v1935_v4 = vmov 0.0  }
 0x5dc   :  { %1757 = vst [vmem:[%s3481_s8] sm:$0xff] %v1935_v4 }
 0x5dd   :  { %1758 = vst [vmem:[%s3481_s8 + $0x8] sm:$0xff] %v1935_v4 }
 0x5de   :  { %1759 = vst [vmem:[%s3481_s8 + $0x10] sm:$0xff] %v1935_v4 }
 0x5df   :  { %1760 = vst [vmem:[%s3481_s8 + $0x18] sm:$0xff] %v1935_v4 }
 0x5e0   :  { %1761 = vst [vmem:[%s3481_s8 + $0x20] sm:$0xff] %v1935_v4 }
 0x5e1   :  { %1762 = vst [vmem:[%s3481_s8 + $0x28] sm:$0xff] %v1935_v4 }
 0x5e2   :  { %1763 = vst [vmem:[%s3481_s8 + $0x30] sm:$0xff] %v1935_v4 }
 0x5e3   :  { %1764 = vst [vmem:[%s3481_s8 + $0x38] sm:$0xff] %v1935_v4 }
 0x5e4 PF:  { %v1768_v31 = vld [vmem:[#allocation2] sm:$0xff] }
 0x5e5   :  { %1769 = vst [vmem:[%s3482_s9] sm:$0xff] %v1768_v31 }

</bundles_post_ra>
